<compile_context>
chip_gen: v6e
topology: v6e:2x2x1
jax: 0.10.0
libtpu: 0.0.40
codegen_flags: <defaults>
</compile_context>

<pallas_src>
import functools

import jax
import jax.numpy as jnp
from jax import lax
from jax.experimental import pallas as pl
from jax.experimental.pallas import tpu as pltpu


SEQ_ALIGN = 512  # all sequence tiles used below divide this


def _round_up(x, m):
    return (x + m - 1) // m * m


def _tile(dim, target, name):
    """Largest of (target, dim) that tiles `dim`; explicit failure otherwise."""
    t = min(target, dim)
    if dim % t != 0:
        raise ValueError(f"{name}={dim} is not divisible by tile size {t}")
    return t


@functools.lru_cache(maxsize=1)
def _vmem_limit_bytes():
    """~3/4 of per-core VMEM (48 MiB on v7x, 96 MiB on v5e/v6e); safe fallback."""
    cap = 64 * 1024 * 1024
    try:
        info = pltpu.get_tpu_info()
        cap = int(getattr(info, "vmem_capacity_bytes", cap) or cap)
    except Exception:  # not on a TPU (e.g. interpret mode on CPU)
        cap = 64 * 1024 * 1024
    return int(min(cap * 3 // 4, 96 * 1024 * 1024))


# ----------------------------------------------------------------------------
# Kernel 1: tiled matmul with f32 accumulation (qkv_proj and o_proj)
# ----------------------------------------------------------------------------
def _matmul_kernel(x_ref, w_ref, o_ref, acc_ref):
    @pl.when(pl.program_id(2) == 0)
    def _():
        acc_ref[...] = jnp.zeros(acc_ref.shape, acc_ref.dtype)

    acc_ref[...] += jnp.dot(x_ref[...], w_ref[...],
                            preferred_element_type=jnp.float32)

    @pl.when(pl.program_id(2) == pl.num_programs(2) - 1)
    def _():
        o_ref[...] = acc_ref[...].astype(o_ref.dtype)


def matmul(x, w, *, tm=512, tn=512, tk=1024):
    M, K = x.shape
    K2, N = w.shape
    assert K == K2
    tm = _tile(M, tm, "M")
    tn = _tile(N, tn, "N")
    tk = _tile(K, tk, "K")
    grid = (M // tm, N // tn, K // tk)
    return pl.pallas_call(
        _matmul_kernel,
        out_shape=jax.ShapeDtypeStruct((M, N), x.dtype),
        grid_spec=pltpu.PrefetchScalarGridSpec(
            num_scalar_prefetch=0,
            grid=grid,
            in_specs=[
                pl.BlockSpec((tm, tk), lambda i, j, k: (i, k)),
                pl.BlockSpec((tk, tn), lambda i, j, k: (k, j)),
            ],
            out_specs=pl.BlockSpec((tm, tn), lambda i, j, k: (i, j)),
            scratch_shapes=[pltpu.VMEM((tm, tn), jnp.float32)],
        ),
        compiler_params=pltpu.CompilerParams(
            dimension_semantics=("parallel", "parallel", "arbitrary"),
            vmem_limit_bytes=_vmem_limit_bytes(),
        ),
    )(x, w)


# ----------------------------------------------------------------------------
# Kernel 2: neox RoPE on ALL q|k head columns of the fused qkv output.
#   out[h] = x[h] * cos_full + rotate_half(x[h]) * sin_signed
#   q heads are additionally pre-scaled by head_dim**-0.5 (so attention needs
#   no score scaling).  One grid step per row block; heads unrolled in-kernel.
# ----------------------------------------------------------------------------
def _rope_kernel(x_ref, cos_ref, sin_ref, o_ref, *, num_q_heads, n_heads,
                 head_dim, scaling):
    D = head_dim
    half = D // 2
    cos = cos_ref[...].astype(jnp.float32)     # (tr, D) bf16 -> f32
    sin = sin_ref[...].astype(jnp.float32)     # signed sin table [-sin | sin]
    for h in range(n_heads):                   # static unroll: q heads then k
        x = x_ref[:, h * D:(h + 1) * D].astype(jnp.float32)
        rot = jnp.concatenate([x[:, half:], x[:, :half]], axis=1)   # [x2 | x1]
        y = x * cos + rot * sin
        if h < num_q_heads:
            y = y * scaling
        o_ref[:, h * D:(h + 1) * D] = y.astype(o_ref.dtype)


def rope_qk(qkv, cos_full, sin_signed, *, num_q_heads, num_kv_heads, head_dim,
            scaling, seq_tile=256):
    T = qkv.shape[0]
    tr = _tile(T, seq_tile, "T")
    n_heads = num_q_heads + num_kv_heads       # q heads then k heads in qkv
    width = n_heads * head_dim
    kernel = functools.partial(_rope_kernel, num_q_heads=num_q_heads,
                               n_heads=n_heads, head_dim=head_dim,
                               scaling=scaling)
    return pl.pallas_call(
        kernel,
        out_shape=jax.ShapeDtypeStruct((T, width), qkv.dtype),
        grid_spec=pltpu.PrefetchScalarGridSpec(
            num_scalar_prefetch=0,
            grid=(T // tr,),
            in_specs=[
                pl.BlockSpec((tr, width), lambda t: (t, 0)),      # q|k columns
                pl.BlockSpec((tr, head_dim), lambda t: (t, 0)),   # cos (bf16)
                pl.BlockSpec((tr, head_dim), lambda t: (t, 0)),   # sin (bf16)
            ],
            out_specs=pl.BlockSpec((tr, width), lambda t: (t, 0)),
        ),
        compiler_params=pltpu.CompilerParams(
            dimension_semantics=("parallel",),
            vmem_limit_bytes=_vmem_limit_bytes(),
        ),
    )(qkv, cos_full, sin_signed)


# ----------------------------------------------------------------------------
# Kernel 3: flash-style causal GQA attention.
#   grid = (kv_head, flat lower-triangle step); the flat step enumerates only
#   (q_tile, kv_tile) pairs with kv_start <= q_end (no dead grid steps).
#   The whole GQA group shares the K/V tiles; q/out blocks are (tq, group*D).
# ----------------------------------------------------------------------------
def _flash_kernel(qi_tab, kv_tab, q_ref, k_ref, v_ref, o_ref,
                  m_ref, l_ref, acc_ref, *, tq, tkv, group, head_dim):
    D = head_dim
    s_idx = pl.program_id(1)
    qi = qi_tab[s_idx]
    kv = kv_tab[s_idx]

    @pl.when(kv == 0)                  # first kv block of this q row: reset
    def _():
        m_ref[...] = jnp.full(m_ref.shape, -jnp.inf, dtype=m_ref.dtype)
        l_ref[...] = jnp.zeros(l_ref.shape, l_ref.dtype)
        acc_ref[...] = jnp.zeros(acc_ref.shape, acc_ref.dtype)

    def update(apply_mask):
        k = k_ref[...]                                  # (tkv, D) bf16, roped
        v = v_ref[...]                                  # (tkv, D) bf16
        if apply_mask:
            row = qi * tq + lax.broadcasted_iota(jnp.int32, (tq, tkv), 0)
            col = kv * tkv + lax.broadcasted_iota(jnp.int32, (tq, tkv), 1)
            allowed = col <= row
        for g in range(group):                          # static unroll
            q_g = q_ref[:, g * D:(g + 1) * D]           # (tq, D) roped+scaled
            s = lax.dot_general(q_g, k, (((1,), (1,)), ((), ())),
                                preferred_element_type=jnp.float32)  # (tq,tkv)
            if apply_mask:
                s = jnp.where(allowed, s, -jnp.inf)
            m_prev = m_ref[:, g:g + 1]
            m_new = jnp.maximum(m_prev, jnp.max(s, axis=-1, keepdims=True))
            alpha = jnp.exp(m_prev - m_new)
            p = jnp.exp(s - m_new)
            l_ref[:, g:g + 1] = (alpha * l_ref[:, g:g + 1]
                                 + jnp.sum(p, axis=-1, keepdims=True))
            acc_ref[:, g * D:(g + 1) * D] = (
                alpha * acc_ref[:, g * D:(g + 1) * D]
                + jnp.dot(p.astype(v.dtype), v,
                          preferred_element_type=jnp.float32))
            m_ref[:, g:g + 1] = m_new

    # Only blocks that reach past the diagonal need the iota/compare/select.
    needs_mask = (kv + 1) * tkv - 1 > qi * tq

    @pl.when(needs_mask)
    def _():
        update(True)

    @pl.when(jnp.logical_not(needs_mask))
    def _():
        update(False)

    # Last kv block for this q row: normalize and store (lane-dense group*D).
    last_kv = ((qi + 1) * tq - 1) // tkv

    @pl.when(kv == last_kv)
    def _():
        for g in range(group):
            inv_l = 1.0 / l_ref[:, g:g + 1]
            o_ref[:, g * D:(g + 1) * D] = (
                acc_ref[:, g * D:(g + 1) * D] * inv_l).astype(o_ref.dtype)


def flash_gqa_attention(qk_roped, qkv, *, num_q_heads, num_kv_heads, head_dim,
                        q_tile=256, kv_tile=512):
    T = qkv.shape[0]
    D = head_dim
    group = num_q_heads // num_kv_heads
    tq = _tile(T, q_tile, "T")
    tkv = _tile(T, kv_tile, "T")
    nq = T // tq

    # Flattened lower-triangle (q_tile, kv_tile) schedule: no dead grid steps.
    qi_list, kv_list = [], []
    for qi in range(nq):
        last = ((qi + 1) * tq - 1) // tkv
        for kv in range(last + 1):
            qi_list.append(qi)
            kv_list.append(kv)
    qi_tab = jnp.asarray(qi_list, dtype=jnp.int32)
    kv_tab = jnp.asarray(kv_list, dtype=jnp.int32)
    n_steps = len(qi_list)

    # q/out: contiguous group of q-head columns for kv head `kvh`.
    q_map = lambda kvh, s, qi_t, kv_t: (qi_t[s], kvh)
    # k: roped k head `kvh` (D-wide block) inside qk_roped.
    k_map = lambda kvh, s, qi_t, kv_t: (kv_t[s], num_q_heads + kvh)
    # v: v head `kvh` straight from the fused qkv output.
    v_map = lambda kvh, s, qi_t, kv_t: (kv_t[s],
                                        num_q_heads + num_kv_heads + kvh)

    kernel = functools.partial(_flash_kernel, tq=tq, tkv=tkv, group=group,
                               head_dim=D)
    return pl.pallas_call(
        kernel,
        out_shape=jax.ShapeDtypeStruct((T, num_q_heads * D), qkv.dtype),
        grid_spec=pltpu.PrefetchScalarGridSpec(
            num_scalar_prefetch=2,
            grid=(num_kv_heads, n_steps),
            in_specs=[
                pl.BlockSpec((tq, group * D), q_map),   # roped+scaled q group
                pl.BlockSpec((tkv, D), k_map),          # roped k head
                pl.BlockSpec((tkv, D), v_map),          # v head
            ],
            out_specs=pl.BlockSpec((tq, group * D), q_map),
            scratch_shapes=[
                pltpu.VMEM((tq, group), jnp.float32),       # running max  m
                pltpu.VMEM((tq, group), jnp.float32),       # running sum  l
                pltpu.VMEM((tq, group * D), jnp.float32),   # running out  acc
            ],
        ),
        compiler_params=pltpu.CompilerParams(
            dimension_semantics=("parallel", "arbitrary"),
            vmem_limit_bytes=_vmem_limit_bytes(),
        ),
    )(qi_tab, kv_tab, qk_roped, qk_roped, qkv)


# ----------------------------------------------------------------------------
# MixtralAttention forward (glue in JAX, hot paths in Pallas)
# ----------------------------------------------------------------------------
class MixtralAttentionPallas:
    def __init__(self, hidden_size, num_heads, num_kv_heads,
                 rope_theta=10000.0, dtype=jnp.bfloat16, key=None):
        self.hidden_size = hidden_size
        self.num_heads = num_heads
        self.num_kv_heads = num_kv_heads
        self.head_dim = hidden_size // num_heads
        # Lane-dense per-head blocks require head_dim to be a multiple of the
        # 128-lane vreg width (real Mixtral uses head_dim=128).
        assert self.head_dim % 128 == 0, "head_dim must be a multiple of 128"
        assert num_heads % num_kv_heads == 0
        self.q_size = num_heads * self.head_dim
        self.kv_size = num_kv_heads * self.head_dim
        self.scaling = self.head_dim ** -0.5
        self.rope_theta = rope_theta
        self.dtype = dtype

        k0, k1 = jax.random.split(key, 2)
        qkv_out = self.q_size + 2 * self.kv_size
        # weights stored [in, out], bf16 (MXU-native); bias=False as in the spec
        self.w_qkv = (jax.random.normal(k0, (hidden_size, qkv_out), jnp.float32)
                      * 0.05).astype(dtype)
        self.w_o = (jax.random.normal(k1, (self.q_size, hidden_size),
                                      jnp.float32) * 0.05).astype(dtype)

    def _rope_tables(self, positions):
        D = self.head_dim
        inv_freq = 1.0 / (self.rope_theta ** (
            jnp.arange(0, D, 2, dtype=jnp.float32) / D))
        freqs = positions.astype(jnp.float32)[:, None] * inv_freq[None, :]
        cos, sin = jnp.cos(freqs), jnp.sin(freqs)               # (T, D/2)
        cos_full = jnp.concatenate([cos, cos], axis=-1)         # (T, D)
        sin_signed = jnp.concatenate([-sin, sin], axis=-1)      # (T, D)
        # bf16 tables halve the RoPE pass' HBM traffic; products are in f32.
        return cos_full.astype(self.dtype), sin_signed.astype(self.dtype)

    def __call__(self, positions, hidden_states):
        T = hidden_states.shape[0]
        x = hidden_states.astype(self.dtype)

        # Pad the sequence to a tile multiple (padded rows are causally inert
        # and sliced off at the end) — no silent full-extent fallback tiles.
        Tp = _round_up(T, SEQ_ALIGN)
        if Tp != T:
            x = jnp.pad(x, ((0, Tp - T), (0, 0)))
            positions = jnp.pad(positions, (0, Tp - T))

        # fused qkv projection; columns: [q heads | k heads | v heads]
        qkv = matmul(x, self.w_qkv)                              # (Tp, q+2kv)

        # neox RoPE on q|k head columns (q pre-scaled by head_dim**-0.5)
        cos_full, sin_signed = self._rope_tables(positions)
        qk_roped = rope_qk(qkv, cos_full, sin_signed,
                           num_q_heads=self.num_heads,
                           num_kv_heads=self.num_kv_heads,
                           head_dim=self.head_dim,
                           scaling=self.scaling)                 # (Tp,(Hq+Hkv)*D)

        # flash-style causal GQA attention -> (Tp, Hq*D) lane-dense
        attn = flash_gqa_attention(qk_roped, qkv,
                                   num_q_heads=self.num_heads,
                                   num_kv_heads=self.num_kv_heads,
                                   head_dim=self.head_dim)

        # output projection, then drop the padded rows
        out = matmul(attn, self.w_o)                             # (Tp, hidden)
        return out[:T]


# ----------------------------------------------------------------------------
# Pure-jnp f32 reference for correctness checking
# ----------------------------------------------------------------------------
def _reference_forward(positions, hidden_states, module):
    x = hidden_states.astype(jnp.bfloat16).astype(jnp.float32)
    wq = module.w_qkv.astype(jnp.float32)
    wo = module.w_o.astype(jnp.float32)
    T = x.shape[0]
    D = module.head_dim
    Hq, Hkv = module.num_heads, module.num_kv_heads

    qkv = x @ wq
    q = qkv[:, :module.q_size].reshape(T, Hq, D)
    k = qkv[:, module.q_size:module.q_size + module.kv_size].reshape(T, Hkv, D)
    v = qkv[:, module.q_size + module.kv_size:].reshape(T, Hkv, D)

    inv_freq = 1.0 / (module.rope_theta ** (
        jnp.arange(0, D, 2, dtype=jnp.float32) / D))
    freqs = positions.astype(jnp.float32)[:, None] * inv_freq[None, :]
    cos, sin = jnp.cos(freqs)[:, None, :], jnp.sin(freqs)[:, None, :]

    def rope(t):
        t1, t2 = t[..., :D // 2], t[..., D // 2:]
        return jnp.concatenate([t1 * cos - t2 * sin, t2 * cos + t1 * sin], -1)

    q, k = rope(q), rope(k)
    group = Hq // Hkv
    k = jnp.repeat(k, group, axis=1)
    v = jnp.repeat(v, group, axis=1)

    s = jnp.einsum("thd,shd->hts", q, k) * module.scaling
    mask = jnp.tril(jnp.ones((T, T), dtype=bool))
    s = jnp.where(mask[None], s, -jnp.inf)
    p = jax.nn.softmax(s, axis=-1)
    o = jnp.einsum("hts,shd->thd", p, v).reshape(T, module.q_size)
    return o @ wo


if __name__ == "__main__":
    key = jax.random.PRNGKey(0)
    k_w, k_x = jax.random.split(key)

    # Small but representative: head_dim=128 (as in real Mixtral), GQA group
    # of 2, multi-tile sequence so the lower-triangle schedule exercises both
    # the masked (diagonal) and unmasked (off-diagonal) flash paths.
    hidden_size = 256
    num_heads = 2
    num_kv_heads = 1
    seq_len = 1024

    module = MixtralAttentionPallas(hidden_size, num_heads, num_kv_heads,
                                    key=k_w)

    hidden_states = jax.random.normal(k_x, (seq_len, hidden_size), jnp.float32)
    positions = jnp.arange(seq_len, dtype=jnp.int32)

    out = module(positions, hidden_states)
    out = jax.block_until_ready(out)
    assert out.shape == (seq_len, hidden_size)
    assert out.dtype == jnp.bfloat16

    ref = _reference_forward(positions, hidden_states, module)
    err = float(jnp.max(jnp.abs(out.astype(jnp.float32) - ref)))
    assert err == err and err < 0.15, f"max abs err {err}"
    print("KERNEL_OK")
</pallas_src>

<mosaic_0001>
module attributes {stable_mosaic.version = 11 : i64} {
  func.func @_matmul_kernel(%arg0: i32, %arg1: i32, %arg2: i32, %arg3: memref<512x256xbf16, #tpu.memory_space<vmem>>, %arg4: memref<256x512xbf16, #tpu.memory_space<vmem>>, %arg5: memref<512x512xbf16, #tpu.memory_space<vmem>>, %arg6: memref<512x512xf32, #tpu.memory_space<vmem>>) attributes {dimension_semantics = [#tpu.dimension_semantics<parallel>, #tpu.dimension_semantics<parallel>, #tpu.dimension_semantics<arbitrary>], iteration_bounds = array<i64: 2, 1, 1>, scalar_prefetch = 0 : i64, scratch_operands = 1 : i64, tpu.core_type = #tpu.core_type<tc>, window_params = [{transform_indices = @transform_0, window_bounds = array<i64: 512, 256>}, {transform_indices = @transform_1, window_bounds = array<i64: 256, 512>}, {transform_indices = @transform_2, window_bounds = array<i64: 512, 512>}]} {
    %c0_i32 = arith.constant 0 : i32
    %0 = arith.cmpi eq, %arg2, %c0_i32 : i32
    %1 = arith.extui %0 : i1 to i32
    %c0_i32_0 = arith.constant 0 : i32
    %2 = arith.cmpi ne, %1, %c0_i32_0 : i32
    scf.if %2 {
      %cst_10 = arith.constant 0.000000e+00 : f32
      %12 = vector.broadcast %cst_10 : f32 to vector<512x512xf32>
      %c0_11 = arith.constant 0 : index
      %c0_12 = arith.constant 0 : index
      %13 = vector.load %arg6[%c0_11, %c0_12] : memref<512x512xf32, #tpu.memory_space<vmem>>, vector<512x512xf32>
      tpu.vector_store %arg6[%c0_11, %c0_12], %12 {strides = array<i32>} : memref<512x512xf32, #tpu.memory_space<vmem>>, vector<512x512xf32>,
    } else {
    }
    %c0 = arith.constant 0 : index
    %c0_1 = arith.constant 0 : index
    %3 = vector.load %arg6[%c0, %c0_1] : memref<512x512xf32, #tpu.memory_space<vmem>>, vector<512x512xf32>
    %c0_2 = arith.constant 0 : index
    %c0_3 = arith.constant 0 : index
    %4 = vector.load %arg3[%c0_2, %c0_3] : memref<512x256xbf16, #tpu.memory_space<vmem>>, vector<512x256xbf16>
    %c0_4 = arith.constant 0 : index
    %c0_5 = arith.constant 0 : index
    %5 = vector.load %arg4[%c0_4, %c0_5] : memref<256x512xbf16, #tpu.memory_space<vmem>>, vector<256x512xbf16>
    %cst = arith.constant dense<0.000000e+00> : vector<512x512xf32>
    %6 = tpu.matmul %4, %5, %cst {dimension_numbers = #tpu.dot_dimension_numbers<[1], [0], [0], [1], [0, 0, 1, 1], [], []>} : vector<512x256xbf16>, vector<256x512xbf16>, vector<512x512xf32> -> vector<512x512xf32>
    %7 = arith.addf %3, %6 : vector<512x512xf32>
    %c0_6 = arith.constant 0 : index
    %c0_7 = arith.constant 0 : index
    %8 = vector.load %arg6[%c0_6, %c0_7] : memref<512x512xf32, #tpu.memory_space<vmem>>, vector<512x512xf32>
    tpu.vector_store %arg6[%c0_6, %c0_7], %7 {strides = array<i32>} : memref<512x512xf32, #tpu.memory_space<vmem>>, vector<512x512xf32>,
    %c0_i32_8 = arith.constant 0 : i32
    %9 = arith.cmpi eq, %arg2, %c0_i32_8 : i32
    %10 = arith.extui %9 : i1 to i32
    %c0_i32_9 = arith.constant 0 : i32
    %11 = arith.cmpi ne, %10, %c0_i32_9 : i32
    scf.if %11 {
      %c0_10 = arith.constant 0 : index
      %c0_11 = arith.constant 0 : index
      %12 = vector.load %arg6[%c0_10, %c0_11] : memref<512x512xf32, #tpu.memory_space<vmem>>, vector<512x512xf32>
      %13 = arith.truncf %12 : vector<512x512xf32> to vector<512x512xbf16>
      %c0_12 = arith.constant 0 : index
      %c0_13 = arith.constant 0 : index
      %14 = vector.load %arg5[%c0_12, %c0_13] : memref<512x512xbf16, #tpu.memory_space<vmem>>, vector<512x512xbf16>
      tpu.vector_store %arg5[%c0_12, %c0_13], %13 {strides = array<i32>} : memref<512x512xbf16, #tpu.memory_space<vmem>>, vector<512x512xbf16>,
    } else {
    }
    return
  }
  func.func @transform_0(%arg0: i32, %arg1: i32, %arg2: i32) -> (i32, i32) {
    %c0_i32 = arith.constant 0 : i32
    return %arg0, %arg2 : i32, i32
  }
  func.func @transform_1(%arg0: i32, %arg1: i32, %arg2: i32) -> (i32, i32) {
    %c0_i32 = arith.constant 0 : i32
    return %arg2, %arg1 : i32, i32
  }
  func.func @transform_2(%arg0: i32, %arg1: i32, %arg2: i32) -> (i32, i32) {
    %c0_i32 = arith.constant 0 : i32
    return %arg0, %arg1 : i32, i32
  }
}

</mosaic_0001>

<bundles_post_ra>
// kernel: tpu_custom_call.1
= control target key start
LH: loop header
LB: loop body
LE: loop exit
PB: predicated region body
PF: predicated region fallthrough
CT: control target
= control target key end

     0   :  { %7 = vsyncpa [#allocation4], 0  ;;  %s5222_s0 = inlined_call_operand.hbm [shape: bf16[1024,256], index: 0, kind: input, shape index: {}]   ;;  %s5223_s1 = inlined_call_operand.hbm [shape: bf16[256,512], index: 1, kind: input, shape index: {}]   ;;  %s5224_s2 = inlined_call_operand.hbm [shape: bf16[1024,512], index: 2, kind: output, shape index: {}]  }
   0x1   :  { %9 = vsyncpa [#allocation4 + $0x1], 0 }
   0x2   :  { %10 = vsyncpa [#allocation7], 0 }
   0x3   :  { %11 = vsyncpa [#allocation5], 0 }
   0x4   :  { %13 = vsyncpa [#allocation5 + $0x1], 0  ;;  %s4843_s9 = smov 0   ;;  %s4845_s10 = smov 0  }
   0x5   :  { %s4847_s11 = smov 0   ;;  %s4849_s12 = smov 0  }
   0x6   :  { %s4851_s13 = smov 0   ;;  %s4853_s14 = smov 0  }
   0x7 LB: > { %s4001_s15 = sadd.s32 4294967295, %s4817_s14   ;;  %s4002_s16 = sadd.s32 4294967294, %s4817_s14   ;;  %s4817_s14 = sphi %s4853_s14, %s19_s14   ;;  %s4813_s13 = sphi %s4851_s13, %s5242_s13   ;;  %s4809_s12 = sphi %s4849_s12, %s5241_s12   ;;  %s4805_s11 = sphi %s4847_s11, %s5240_s11   ;;  %s4801_s10 = sphi %s4845_s10, %s5239_s10   ;;  %s4797_s9 = sphi %s4843_s9, %s5238_s9  }
   0x8   : > { %p60_p0 = scmp.ne.s32.totalorder %s4801_s10, %s4797_s9  ;;  %p4877_p1 = scmp.eq.s32.totalorder %s4001_s15, 0 }
   0x9   : > { %p4881_p2 = scmp.eq.s32.totalorder %s4001_s15, 1  ;;  %p120_p3 = scmp.eq.s32.totalorder %s4002_s16, 1 }
   0xa   : > { %p4887_p4 = por %p4877_p1, %p60_p0  ;;  %p4003_p5 = scmp.ge.s32.totalorder %s4817_s14, 1 }
   0xb   : > { %p4892_p6 = por %p120_p3, %p60_p0  ;;  %p127_p7 = scmp.lt.s32.totalorder %s4817_s14, 3 }
   0xc   : > { %s5228_s19 = scalar_select %p4887_p4, 1, 0 }
   0xd   : > { %s5229_s20 = scalar_select %p4892_p6, 1, 0 }
   0xe   : > { %p4897_p8 = pnand %p4003_p5, %p127_p7  ;;  %s4819_s22 = smov [#allocation6]  }
   0xf   : > { %s145_s23 = sshll.u32 %s4819_s22, 4  ;;  %s38_s25 = sadd.s32 1, %s4813_s13  ;;  %s146_s23 = int_to_ptr.vmem [resolvable:$true] %s145_s23 }
  0x10   : > { %p4416_p9 = pneg %p4897_p8  ;;  %s4690_s26 = scalar_lea.vmem %s146_s23, 8192 }
  0x11   : > { %p4691_p13 = scmp.ne.s32.totalorder %s146_s23, %s4690_s26  ;;  %p4698_p5 = scmp.lt.s32.totalorder %s146_s23, %s146_s23 }
  0x12   : > { %p4906_p11 = pnand %p4416_p9, %p4877_p1  ;;  %p4699_p7 = scmp.lt.s32.totalorder %s4690_s26, %s4690_s26 }
  0x14   : > { %p4681_p12 = pneg %p4906_p11  ;;  %p4700_p6 = por %p4699_p7, %p4698_p5 }
  0x16   : > { %p4693_p0 = pnand %p4691_p13, %p4681_p12 }
  0x18   : > { %p4694_p3 = pneg %p4693_p0 }
  0x1a   : > { %p4701_p4 = pnand %p4700_p6, %p4694_p3 }
  0x1c   : > { %4704 = shalt.err (!%p4701_p4)
}
  0x1d   : > { %s4820_s27 = smov 256   ;;  %s4821_s28 = smov 16  }
  0x1e   : > { %4419 = dma.hbm_to_vmem [thread:$0]  (!%p4906_p11), %s5223_s1, 8192, %s146_s23, [#allocation7], %s4820_s27, %s4820_s27, %s4821_s28  }
  0x1f   : > { %p40_p6 = scmp.ge.s32.totalorder %s38_s25, 2  ;;  %s47_s3 = sadd.s32 1, %s4805_s11 }
  0x20   : > { %p54_p4 = scmp.ne.s32.totalorder %s4805_s11, %s4801_s10  ;;  %p55_p9 = scmp.eq.s32.totalorder %s4817_s14, 0 }
  0x21   : > { %s5244_s25 = smov (%p40_p6, %s38_s25), 0  ;;  %p4429_p0 = scmp.lt.s32.totalorder %s4817_s14, 2 }
  0x22   : > { %p4924_p12 = por %p55_p9, %p54_p4  ;;  %p4930_p13 = por %p4881_p2, %p54_p4 }
  0x23   : > { %s42_s6 = ssub.s32 %s4813_s13, %s5244_s25  ;;  %s159_s7 = sand.u32 1, %s4805_s11  }
  0x24   : > { %p45_p11 = scmp.eq.s32.totalorder %s42_s6, 0  ;;  %s4006_s8 = sshll.u32 %s159_s7, 9 }
  0x25   : > { %s4277_s16 = sshll.u32 %s4813_s13, 13  ;;  %s163_s26 = scalar_lea.vmem [#allocation3], %s4006_s8 }
  0x26   : > { %s4939_s15 = scalar_select %p45_p11, %s4805_s11, %s47_s3  }
  0x27   : > { %s172_s24 = scalar_lea.hbm %s5222_s0, %s4277_s16  ;;  %s173_s27 = sshll.u32 %s163_s26, 4  ;;  %s174_s27 = int_to_ptr.vmem [resolvable:$true] %s173_s27 }
  0x28   : > { %p4947_p2 = pnand %p4429_p0, %p4924_p12  ;;  %s160_s28 = scalar_lea.sflag [#allocation4], %s159_s7 }
  0x29   : > { %s4718_s29 = scalar_lea.vmem %s174_s27, 8192  ;;  %s4822_s30 = smov [#allocation3]  }
  0x2a   : > { %p4707_p3 = pneg %p4947_p2  ;;  %p4719_p5 = scmp.ne.s32.totalorder %s174_s27, %s4718_s29 }
  0x2b   : > { %s4723_s3 = sshll.u32 %s4822_s30, 4  ;;  %s4724_s3 = int_to_ptr.vmem [resolvable:$false] %s4723_s3 }
  0x2c   : > { %p4721_p7 = pnand %p4719_p5, %p4707_p3  ;;  %s4725_s6 = scalar_lea.vmem %s4724_s3, 16384 }
  0x2d   : > { %p4726_p4 = scmp.lt.s32.totalorder %s174_s27, %s4724_s3  ;;  %p4727_p9 = scmp.lt.s32.totalorder %s4725_s6, %s4718_s29 }
  0x2e   : > { %p4722_p6 = pneg %p4721_p7 }
  0x2f   : > { %p4728_p11 = por %p4727_p9, %p4726_p4 }
  0x31   : > { %p4729_p10 = pnand %p4728_p11, %p4722_p6 }
  0x33   : > { %4732 = shalt.err (!%p4729_p10)
}
  0x34   : > { %s4823_s4 = smov 128   ;;  %s4824_s8 = smov 8  }
  0x35   : > { %4423 = dma.hbm_to_vmem [thread:$0]  (!%p4947_p2), %s172_s24, 8192, %s174_s27, %s160_s28, %s4823_s4, %s4823_s4, %s4824_s8  }
  0x36   : > { %185 = sbr.rel (%p4897_p8) target bundleno = 590 (0x24e), region = 28  ;;  %s4958_s7 = sand.u32 (!%p4897_p8), 1, %s4801_s10  }
  0x37   : > { %s4011_s16 = sshll.u32 (!%p4897_p8), %s4958_s7, 9  ;;  %s188_s22 = scalar_lea.sflag (!%p4897_p8), [#allocation4], %s4958_s7 }
  0x38   : > { %s4962_s23 = scalar_lea.vmem (!%p4897_p8), [#allocation3], %s4011_s16  ;;  %p5235_p12 = scmp.ne.s32.totalorder (!%p4897_p8), %s5228_s19, 0 }
  0x3b   : > { %4784 = dma.done.wait (%p5235_p12), %s188_s22, 8192  }
  0x3c   : > { %4786 = vsyncadd (%p5235_p12), %s188_s22, 4294959104 }
  0x3d   : > { %4788 = dma.done.wait (%p4877_p1), [#allocation7], 8192  }
  0x3e   : > { %4790 = vsyncadd (%p4877_p1), [#allocation7], 4294959104  ;;  %v4487_v0 = vld [vmem:[#allocation6 + $0xe4] ss:$16 sps:$4 sm:$0xff]   ;;  %v4489_v1 = vld [vmem:[#allocation6 + $0xec] ss:$16 sps:$4 sm:$0xff]  }
  0x3f   : > { %1506 = vmatprep.subr.bf16.mxu0 %v4487_v0  ;;  %v4491_v2 = vld [vmem:[#allocation6 + $0xe0] ss:$16 sps:$4 sm:$0xff]   ;;  %v4492_v3 = vld [vmem:[#allocation6 + $0xe8] ss:$16 sps:$4 sm:$0xff]   ;;  %1859 = vmatprep.subr.bf16.mxu1 %v4489_v1  ;;  %v4493_v4 = vld [vmem:[#allocation6 + $0xc4] ss:$16 sps:$4 sm:$0xff]  }
  0x40   : > { %1507 = vmatpush1.bf16.msra.mxu0 %v4491_v2  ;;  %1860 = vmatpush1.bf16.msra.mxu1 %v4492_v3  ;;  %v4495_v5 = vld [vmem:[#allocation6 + $0xcc] ss:$16 sps:$4 sm:$0xff]   ;;  %v4497_v6 = vld [vmem:[#allocation6 + $0xc0] ss:$16 sps:$4 sm:$0xff]   ;;  %v4498_v7 = vld [vmem:[#allocation6 + $0xc8] ss:$16 sps:$4 sm:$0xff]  }
  0x41   : > { %1508 = vmatprep.subr.bf16.mxu0 %v4493_v4  ;;  %1861 = vmatprep.subr.bf16.mxu1 %v4495_v5  ;;  %v4499_v8 = vld [vmem:[#allocation6 + $0xa4] ss:$16 sps:$4 sm:$0xff]   ;;  %v4501_v9 = vld [vmem:[#allocation6 + $0xac] ss:$16 sps:$4 sm:$0xff]   ;;  %v4503_v10 = vld [vmem:[#allocation6 + $0xa0] ss:$16 sps:$4 sm:$0xff]  }
  0x42   : > { %v4504_v11 = vld [vmem:[#allocation6 + $0xa8] ss:$16 sps:$4 sm:$0xff]   ;;  %v4505_v12 = vld [vmem:[#allocation6 + $0x84] ss:$16 sps:$4 sm:$0xff]   ;;  %v4507_v13 = vld [vmem:[#allocation6 + $0x8c] ss:$16 sps:$4 sm:$0xff]  }
  0x43   : > { %v4509_v14 = vld [vmem:[#allocation6 + $0x80] ss:$16 sps:$4 sm:$0xff]   ;;  %v4510_v15 = vld [vmem:[#allocation6 + $0x88] ss:$16 sps:$4 sm:$0xff]   ;;  %v4511_v16 = vld [vmem:[#allocation6 + $0x64] ss:$16 sps:$4 sm:$0xff]  }
  0x44   : > { %1509 = vmatpush1.bf16.msra.mxu0 %v4497_v6  ;;  %1862 = vmatpush1.bf16.msra.mxu1 %v4498_v7  ;;  %v4513_v17 = vld [vmem:[#allocation6 + $0x6c] ss:$16 sps:$4 sm:$0xff]   ;;  %v4515_v18 = vld [vmem:[#allocation6 + $0x60] ss:$16 sps:$4 sm:$0xff]   ;;  %v4516_v19 = vld [vmem:[#allocation6 + $0x68] ss:$16 sps:$4 sm:$0xff]  }
  0x45   : > { %1510 = vmatprep.subr.bf16.mxu0 %v4499_v8  ;;  %1863 = vmatprep.subr.bf16.mxu1 %v4501_v9  ;;  %v4517_v20 = vld [vmem:[#allocation6 + $0x44] ss:$16 sps:$4 sm:$0xff]   ;;  %v4519_v21 = vld [vmem:[#allocation6 + $0x4c] ss:$16 sps:$4 sm:$0xff]   ;;  %v4521_v22 = vld [vmem:[#allocation6 + $0x40] ss:$16 sps:$4 sm:$0xff]  }
  0x46   : > { %v4522_v23 = vld [vmem:[#allocation6 + $0x48] ss:$16 sps:$4 sm:$0xff]   ;;  %v4523_v24 = vld [vmem:[#allocation6 + $0x24] ss:$16 sps:$4 sm:$0xff]   ;;  %v4525_v25 = vld [vmem:[#allocation6 + $0x2c] ss:$16 sps:$4 sm:$0xff]  }
  0x47   : > { %v4527_v26 = vld [vmem:[#allocation6 + $0x20] ss:$16 sps:$4 sm:$0xff]   ;;  %v4528_v27 = vld [vmem:[#allocation6 + $0x28] ss:$16 sps:$4 sm:$0xff]   ;;  %v4529_v28 = vld [vmem:[#allocation6 + $0x4] ss:$16 sps:$4 sm:$0xff]  }
  0x48   : > { %1511 = vmatpush1.bf16.msra.mxu0 %v4503_v10  ;;  %1864 = vmatpush1.bf16.msra.mxu1 %v4504_v11  ;;  %v4531_v29 = vld [vmem:[#allocation6 + $0xc] ss:$16 sps:$4 sm:$0xff]   ;;  %v4533_v30 = vld [vmem:[#allocation6] ss:$16 sps:$4 sm:$0xff]   ;;  %v4534_v31 = vld [vmem:[#allocation6 + $0x8] ss:$16 sps:$4 sm:$0xff]  }
  0x49   : > { %1512 = vmatprep.subr.bf16.mxu0 %v4505_v12  ;;  %1865 = vmatprep.subr.bf16.mxu1 %v4507_v13  ;;  %v4535_v32 = vld [vmem:[#allocation6 + $0x1e4] ss:$16 sps:$4 sm:$0xff]   ;;  %v4537_v33 = vld [vmem:[#allocation6 + $0x1ec] ss:$16 sps:$4 sm:$0xff]   ;;  %v4539_v34 = vld [vmem:[#allocation6 + $0x1e0] ss:$16 sps:$4 sm:$0xff]  }
  0x4a   : > { %v4540_v35 = vld [vmem:[#allocation6 + $0x1e8] ss:$16 sps:$4 sm:$0xff]   ;;  %v4541_v36 = vld [vmem:[#allocation6 + $0x1c4] ss:$16 sps:$4 sm:$0xff]   ;;  %v4543_v37 = vld [vmem:[#allocation6 + $0x1cc] ss:$16 sps:$4 sm:$0xff]  }
  0x4b   : > { %v4545_v38 = vld [vmem:[#allocation6 + $0x1c0] ss:$16 sps:$4 sm:$0xff]   ;;  %v4546_v39 = vld [vmem:[#allocation6 + $0x1c8] ss:$16 sps:$4 sm:$0xff]   ;;  %v4547_v40 = vld [vmem:[#allocation6 + $0x1a4] ss:$16 sps:$4 sm:$0xff]  }
  0x4c   : > { %1513 = vmatpush1.bf16.msra.mxu0 %v4509_v14  ;;  %1866 = vmatpush1.bf16.msra.mxu1 %v4510_v15  ;;  %v4549_v41 = vld [vmem:[#allocation6 + $0x1ac] ss:$16 sps:$4 sm:$0xff]   ;;  %v4551_v42 = vld [vmem:[#allocation6 + $0x1a0] ss:$16 sps:$4 sm:$0xff]   ;;  %v4552_v43 = vld [vmem:[#allocation6 + $0x1a8] ss:$16 sps:$4 sm:$0xff]  }
  0x4d   : > { %1514 = vmatprep.subr.bf16.mxu0 %v4511_v16  ;;  %1867 = vmatprep.subr.bf16.mxu1 %v4513_v17  ;;  %v4553_v44 = vld [vmem:[#allocation6 + $0x184] ss:$16 sps:$4 sm:$0xff]   ;;  %v4555_v45 = vld [vmem:[#allocation6 + $0x18c] ss:$16 sps:$4 sm:$0xff]   ;;  %v4557_v46 = vld [vmem:[#allocation6 + $0x180] ss:$16 sps:$4 sm:$0xff]  }
  0x4e   : > { %v4558_v47 = vld [vmem:[#allocation6 + $0x188] ss:$16 sps:$4 sm:$0xff]   ;;  %v4585_v48 = vld [vmem:[%s4962_s23 + $0x4] ss:$8 sps:$4 sm:$0xff]   ;;  %v4563_v51 = vld [vmem:[#allocation6 + $0x160] ss:$16 sps:$4 sm:$0xff]  }
  0x4f   : > { %v4559_v49 = vld [vmem:[#allocation6 + $0x164] ss:$16 sps:$4 sm:$0xff]   ;;  %v4561_v50 = vld [vmem:[#allocation6 + $0x16c] ss:$16 sps:$4 sm:$0xff]   ;;  %1538 = vmatprep.mubr.bf16.mxu0 %v4585_v48  ;;  %1891 = vmatprep.mubr.bf16.mxu1 %v4585_v48  ;;  %v4564_v52 = vld [vmem:[#allocation6 + $0x168] ss:$16 sps:$4 sm:$0xff]  }
  0x50   : > { %1515 = vmatpush1.bf16.msra.mxu0 %v4515_v18  ;;  %1868 = vmatpush1.bf16.msra.mxu1 %v4516_v19  ;;  %v4565_v53 = vld [vmem:[#allocation6 + $0x144] ss:$16 sps:$4 sm:$0xff]   ;;  %v4567_v54 = vld [vmem:[#allocation6 + $0x14c] ss:$16 sps:$4 sm:$0xff]   ;;  %v4569_v55 = vld [vmem:[#allocation6 + $0x140] ss:$16 sps:$4 sm:$0xff]  }
  0x51   : > { %1516 = vmatprep.subr.bf16.mxu0 %v4517_v20  ;;  %1869 = vmatprep.subr.bf16.mxu1 %v4519_v21  ;;  %v4570_v56 = vld [vmem:[#allocation6 + $0x148] ss:$16 sps:$4 sm:$0xff]   ;;  %v4571_v57 = vld [vmem:[#allocation6 + $0x124] ss:$16 sps:$4 sm:$0xff]   ;;  %v4573_v58 = vld [vmem:[#allocation6 + $0x12c] ss:$16 sps:$4 sm:$0xff]  }
  0x52   : > { %v4575_v59 = vld [vmem:[#allocation6 + $0x120] ss:$16 sps:$4 sm:$0xff]   ;;  %v4576_v60 = vld [vmem:[#allocation6 + $0x128] ss:$16 sps:$4 sm:$0xff]   ;;  %v4577_v61 = vld [vmem:[#allocation6 + $0x104] ss:$16 sps:$4 sm:$0xff]  }
  0x53   : > { %v4579_v62 = vld [vmem:[#allocation6 + $0x10c] ss:$16 sps:$4 sm:$0xff]   ;;  %v4581_v63 = vld [vmem:[#allocation6 + $0x100] ss:$16 sps:$4 sm:$0xff]   ;;  %v4582_v0 = vld [vmem:[#allocation6 + $0x108] ss:$16 sps:$4 sm:$0xff]  }
  0x54   : > { %1517 = vmatpush1.bf16.msra.mxu0 %v4521_v22  ;;  %1870 = vmatpush1.bf16.msra.mxu1 %v4522_v23  ;;  %v4583_v1 = vld [vmem:[%s4962_s23] ss:$8 sps:$4 sm:$0xff]   ;;  %v4586_v2 = vld [vmem:[%s4962_s23 + $0x14] ss:$8 sps:$4 sm:$0xff]   ;;  %v4588_v3 = vld [vmem:[%s4962_s23 + $0x10] ss:$8 sps:$4 sm:$0xff]  }
  0x55   : > { %1518 = vmatprep.subr.bf16.mxu0 %v4523_v24  ;;  %1871 = vmatprep.subr.bf16.mxu1 %v4525_v25  ;;  %v4589_v4 = vld [vmem:[%s4962_s23 + $0x24] ss:$8 sps:$4 sm:$0xff]   ;;  %v4591_v5 = vld [vmem:[%s4962_s23 + $0x20] ss:$8 sps:$4 sm:$0xff]   ;;  %v4592_v6 = vld [vmem:[%s4962_s23 + $0x34] ss:$8 sps:$4 sm:$0xff]  }
  0x56   : > { %v4594_v7 = vld [vmem:[%s4962_s23 + $0x30] ss:$8 sps:$4 sm:$0xff]   ;;  %v4595_v8 = vld [vmem:[%s4962_s23 + $0x44] ss:$8 sps:$4 sm:$0xff]   ;;  %v4597_v9 = vld [vmem:[%s4962_s23 + $0x40] ss:$8 sps:$4 sm:$0xff]  }
  0x57   : > { %v4598_v10 = vld [vmem:[%s4962_s23 + $0x54] ss:$8 sps:$4 sm:$0xff]   ;;  %v4600_v11 = vld [vmem:[%s4962_s23 + $0x50] ss:$8 sps:$4 sm:$0xff]   ;;  %v4601_v12 = vld [vmem:[%s4962_s23 + $0x64] ss:$8 sps:$4 sm:$0xff]  }
  0x58   : > { %1519 = vmatpush1.bf16.msra.mxu0 %v4527_v26  ;;  %1872 = vmatpush1.bf16.msra.mxu1 %v4528_v27  ;;  %v4603_v13 = vld [vmem:[%s4962_s23 + $0x60] ss:$8 sps:$4 sm:$0xff]   ;;  %v4604_v14 = vld [vmem:[%s4962_s23 + $0x74] ss:$8 sps:$4 sm:$0xff]   ;;  %v4606_v15 = vld [vmem:[%s4962_s23 + $0x70] ss:$8 sps:$4 sm:$0xff]  }
  0x59   : > { %1520 = vmatprep.subr.bf16.mxu0 %v4529_v28  ;;  %1873 = vmatprep.subr.bf16.mxu1 %v4531_v29  ;;  %v4607_v16 = vld [vmem:[%s4962_s23 + $0x84] ss:$8 sps:$4 sm:$0xff]   ;;  %v4609_v17 = vld [vmem:[%s4962_s23 + $0x80] ss:$8 sps:$4 sm:$0xff]   ;;  %v4610_v18 = vld [vmem:[%s4962_s23 + $0x94] ss:$8 sps:$4 sm:$0xff]  }
  0x5a   : > { %v4612_v19 = vld [vmem:[%s4962_s23 + $0x90] ss:$8 sps:$4 sm:$0xff]   ;;  %v4613_v20 = vld [vmem:[%s4962_s23 + $0xa4] ss:$8 sps:$4 sm:$0xff]   ;;  %v4615_v21 = vld [vmem:[%s4962_s23 + $0xa0] ss:$8 sps:$4 sm:$0xff]  }
  0x5b   : > { %v4616_v22 = vld [vmem:[%s4962_s23 + $0xb4] ss:$8 sps:$4 sm:$0xff]   ;;  %v4618_v23 = vld [vmem:[%s4962_s23 + $0xb0] ss:$8 sps:$4 sm:$0xff]   ;;  %v4619_v24 = vld [vmem:[%s4962_s23 + $0xc4] ss:$8 sps:$4 sm:$0xff]  }
  0x5c   : > { %1521 = vmatpush1.bf16.msra.mxu0 %v4533_v30  ;;  %1874 = vmatpush1.bf16.msra.mxu1 %v4534_v31  ;;  %v4621_v25 = vld [vmem:[%s4962_s23 + $0xc0] ss:$8 sps:$4 sm:$0xff]   ;;  %v4622_v26 = vld [vmem:[%s4962_s23 + $0xd4] ss:$8 sps:$4 sm:$0xff]   ;;  %v4624_v27 = vld [vmem:[%s4962_s23 + $0xd0] ss:$8 sps:$4 sm:$0xff]  }
  0x5d   : > { %1522 = vmatprep.subr.bf16.mxu0 %v4535_v32  ;;  %1875 = vmatprep.subr.bf16.mxu1 %v4537_v33  ;;  %v4625_v28 = vld [vmem:[%s4962_s23 + $0xe4] ss:$8 sps:$4 sm:$0xff]   ;;  %v4627_v29 = vld [vmem:[%s4962_s23 + $0xe0] ss:$8 sps:$4 sm:$0xff]   ;;  %v4628_v30 = vld [vmem:[%s4962_s23 + $0xf4] ss:$8 sps:$4 sm:$0xff]  }
  0x5e   : > { %v4630_v31 = vld [vmem:[%s4962_s23 + $0xf0] ss:$8 sps:$4 sm:$0xff]   ;;  %v4631_v32 = vld [vmem:[%s4962_s23 + $0x104] ss:$8 sps:$4 sm:$0xff]   ;;  %v4633_v33 = vld [vmem:[%s4962_s23 + $0x100] ss:$8 sps:$4 sm:$0xff]  }
  0x5f   : > { %v4655_v48 = vld [vmem:[%s4962_s23 + $0x184] ss:$8 sps:$4 sm:$0xff]   ;;  %s4013_s17 = sshll.u32 %s4958_s7, 10  ;;  %s4407_s21 = sshll.u32 %s4809_s12, 14 }
  0x60   : > { %1523 = vmatpush2.bf16.msra.mxu0 %v4539_v34  ;;  %1876 = vmatpush2.bf16.msra.mxu1 %v4540_v35  ;;  %v4634_v34 = vld [vmem:[%s4962_s23 + $0x114] ss:$8 sps:$4 sm:$0xff]   ;;  %v4636_v35 = vld [vmem:[%s4962_s23 + $0x110] ss:$8 sps:$4 sm:$0xff]   ;;  %s5025_s19 = scalar_lea.vmem [#allocation8], %s4013_s17  ;;  %s5170_s18 = scalar_lea.hbm %s5224_s2, %s4407_s21 }
  0x61   : > { %1524 = vmatprep.subr.bf16.mxu0 %v4541_v36  ;;  %1877 = vmatprep.subr.bf16.mxu1 %v4543_v37  ;;  %v4637_v36 = vld [vmem:[%s4962_s23 + $0x124] ss:$8 sps:$4 sm:$0xff]   ;;  %v4639_v37 = vld [vmem:[%s4962_s23 + $0x120] ss:$8 sps:$4 sm:$0xff]   ;;  %s3896_s24 = sshll.u32 %s5025_s19, 4  ;;  %s3880_s12 = scalar_lea.sflag [#allocation5], %s4958_s7  ;;  %s5172_s24 = int_to_ptr.vmem [resolvable:$true] %s3896_s24 }
  0x62   : > { %s4733_s28 = scalar_lea.vmem %s5172_s24, 16384  ;;  %s4825_s29 = smov [#allocation8]  }
  0x63   : > { %p4734_p1 = scmp.ne.s32.totalorder %s5172_s24, %s4733_s28  ;;  %s4737_s30 = sshll.u32 %s4825_s29, 4  ;;  %s4738_s30 = int_to_ptr.vmem [resolvable:$false] %s4737_s30 }
  0x64   : > { %1525 = vmatpush2.bf16.msra.mxu0 %v4545_v38  ;;  %1878 = vmatpush2.bf16.msra.mxu1 %v4546_v39  ;;  %v4640_v38 = vld [vmem:[%s4962_s23 + $0x134] ss:$8 sps:$4 sm:$0xff]   ;;  %v4642_v39 = vld [vmem:[%s4962_s23 + $0x130] ss:$8 sps:$4 sm:$0xff]   ;;  %s4739_s3 = scalar_lea.vmem %s4738_s30, 32768  ;;  %p4740_p0 = scmp.lt.s32.totalorder %s5172_s24, %s4738_s30 }
  0x65   : > { %1526 = vmatprep.subr.bf16.mxu0 %v4547_v40  ;;  %1879 = vmatprep.subr.bf16.mxu1 %v4549_v41  ;;  %v4643_v40 = vld [vmem:[%s4962_s23 + $0x144] ss:$8 sps:$4 sm:$0xff]   ;;  %v4645_v41 = vld [vmem:[%s4962_s23 + $0x140] ss:$8 sps:$4 sm:$0xff]   ;;  %p4735_p8 = pnand %p4734_p1, %p4930_p13  ;;  %p4741_p2 = scmp.lt.s32.totalorder %s4739_s3, %s4733_s28 }
  0x67   : > { %p4736_p10 = pneg %p4735_p8  ;;  %p4742_p3 = por %p4741_p2, %p4740_p0 }
  0x68   : > { %1527 = vmatpush2.bf16.msra.mxu0 %v4551_v42  ;;  %1880 = vmatpush2.bf16.msra.mxu1 %v4552_v43  ;;  %v4646_v42 = vld [vmem:[%s4962_s23 + $0x154] ss:$8 sps:$4 sm:$0xff]   ;;  %v4648_v43 = vld [vmem:[%s4962_s23 + $0x150] ss:$8 sps:$4 sm:$0xff]  }
  0x69   : > { %1528 = vmatprep.subr.bf16.mxu0 %v4553_v44  ;;  %1881 = vmatprep.subr.bf16.mxu1 %v4555_v45  ;;  %v4649_v44 = vld [vmem:[%s4962_s23 + $0x164] ss:$8 sps:$4 sm:$0xff]   ;;  %v4651_v45 = vld [vmem:[%s4962_s23 + $0x160] ss:$8 sps:$4 sm:$0xff]   ;;  %p4743_p5 = pnand %p4742_p3, %p4736_p10 }
  0x6c   : > { %1529 = vmatpush2.bf16.msra.mxu0 %v4557_v46  ;;  %1882 = vmatpush2.bf16.msra.mxu1 %v4558_v47  ;;  %v4652_v46 = vld [vmem:[%s4962_s23 + $0x174] ss:$8 sps:$4 sm:$0xff]   ;;  %v4654_v47 = vld [vmem:[%s4962_s23 + $0x170] ss:$8 sps:$4 sm:$0xff]  }
  0x6d   : > { %1530 = vmatprep.subr.bf16.mxu0 %v4559_v49  ;;  %1883 = vmatprep.subr.bf16.mxu1 %v4561_v50  ;;  %v4657_v49 = vld [vmem:[%s4962_s23 + $0x180] ss:$8 sps:$4 sm:$0xff]   ;;  %v4658_v50 = vld [vmem:[%s4962_s23 + $0x194] ss:$8 sps:$4 sm:$0xff]  }
  0x70   : > { %1531 = vmatpush2.bf16.msra.mxu0 %v4563_v51  ;;  %1884 = vmatpush2.bf16.msra.mxu1 %v4564_v52 }
  0x71   : > { %1532 = vmatprep.subr.bf16.mxu0 %v4565_v53  ;;  %1885 = vmatprep.subr.bf16.mxu1 %v4567_v54 }
  0x74   : > { %1533 = vmatpush2.bf16.msra.mxu0 %v4569_v55  ;;  %1886 = vmatpush2.bf16.msra.mxu1 %v4570_v56 }
  0x75   : > { %1534 = vmatprep.subr.bf16.mxu0 %v4571_v57  ;;  %1887 = vmatprep.subr.bf16.mxu1 %v4573_v58 }
  0x78   : > { %1535 = vmatpush2.bf16.msra.mxu0 %v4575_v59  ;;  %1888 = vmatpush2.bf16.msra.mxu1 %v4576_v60  ;;  %v4660_v59 = vld [vmem:[%s4962_s23 + $0x190] ss:$8 sps:$4 sm:$0xff]   ;;  %v4661_v60 = vld [vmem:[%s4962_s23 + $0x1a4] ss:$8 sps:$4 sm:$0xff]  }
  0x79   : > { %1536 = vmatprep.subr.bf16.mxu0 %v4577_v61  ;;  %1889 = vmatprep.subr.bf16.mxu1 %v4579_v62 }
  0x7c   : > { %1537 = vmatpush2.bf16.msra.mxu0 %v4581_v63  ;;  %1890 = vmatpush2.bf16.msra.mxu1 %v4582_v0 }
  0x7f   : > { %1539 = vmatmul.mubr.bf16.vlgmr.msra.gmra.mxu0 %v4583_v1  ;;  %1892 = vmatmul.mubr.bf16.vlgmr.msra.gmra.mxu1 %v4583_v1 }
  0x80   : > { %1548 = vmatprep.mubr.bf16.mxu0 %v4586_v2  ;;  %1901 = vmatprep.mubr.bf16.mxu1 %v4586_v2 }
  0x87   : > { %1549 = vmatmul.mubr.bf16.gmra.mxu0 %v4588_v3  ;;  %1902 = vmatmul.mubr.bf16.gmra.mxu1 %v4588_v3 }
  0x88   : > { %1558 = vmatprep.mubr.bf16.mxu0 %v4589_v4  ;;  %1911 = vmatprep.mubr.bf16.mxu1 %v4589_v4 }
  0x8f   : > { %1559 = vmatmul.mubr.bf16.gmra.mxu0 %v4591_v5  ;;  %1912 = vmatmul.mubr.bf16.gmra.mxu1 %v4591_v5 }
  0x90   : > { %1568 = vmatprep.mubr.bf16.mxu0 %v4592_v6  ;;  %1921 = vmatprep.mubr.bf16.mxu1 %v4592_v6 }
  0x97   : > { %1569 = vmatmul.mubr.bf16.gmra.mxu0 %v4594_v7  ;;  %1922 = vmatmul.mubr.bf16.gmra.mxu1 %v4594_v7 }
  0x98   : > { %1578 = vmatprep.mubr.bf16.mxu0 %v4595_v8  ;;  %1931 = vmatprep.mubr.bf16.mxu1 %v4595_v8 }
  0x9f   : > { %1579 = vmatmul.mubr.bf16.gmra.mxu0 %v4597_v9  ;;  %1932 = vmatmul.mubr.bf16.gmra.mxu1 %v4597_v9  ;;  %v4663_v9 = vld [vmem:[%s4962_s23 + $0x1a0] ss:$8 sps:$4 sm:$0xff]  }
  0xa0   : > { %1588 = vmatprep.mubr.bf16.mxu0 %v4598_v10  ;;  %1941 = vmatprep.mubr.bf16.mxu1 %v4598_v10  ;;  %v4664_v10 = vld [vmem:[%s4962_s23 + $0x1b4] ss:$8 sps:$4 sm:$0xff]  }
  0xa7   : > { %1589 = vmatmul.mubr.bf16.gmra.mxu0 %v4600_v11  ;;  %1942 = vmatmul.mubr.bf16.gmra.mxu1 %v4600_v11 }
  0xa8   : > { %1598 = vmatprep.mubr.bf16.mxu0 %v4601_v12  ;;  %1951 = vmatprep.mubr.bf16.mxu1 %v4601_v12 }
  0xaf   : > { %1599 = vmatmul.mubr.bf16.gmra.mxu0 %v4603_v13  ;;  %1952 = vmatmul.mubr.bf16.gmra.mxu1 %v4603_v13 }
  0xb0   : > { %1608 = vmatprep.mubr.bf16.mxu0 %v4604_v14  ;;  %1961 = vmatprep.mubr.bf16.mxu1 %v4604_v14 }
  0xb7   : > { %1609 = vmatmul.mubr.bf16.gmra.mxu0 %v4606_v15  ;;  %1962 = vmatmul.mubr.bf16.gmra.mxu1 %v4606_v15 }
  0xb8   : > { %1618 = vmatprep.mubr.bf16.mxu0 %v4607_v16  ;;  %1971 = vmatprep.mubr.bf16.mxu1 %v4607_v16 }
  0xbf   : > { %1619 = vmatmul.mubr.bf16.gmra.mxu0 %v4609_v17  ;;  %1972 = vmatmul.mubr.bf16.gmra.mxu1 %v4609_v17 }
  0xc0   : > { %1628 = vmatprep.mubr.bf16.mxu0 %v4610_v18  ;;  %1981 = vmatprep.mubr.bf16.mxu1 %v4610_v18 }
  0xc7   : > { %1629 = vmatmul.mubr.bf16.gmra.mxu0 %v4612_v19  ;;  %1982 = vmatmul.mubr.bf16.gmra.mxu1 %v4612_v19 }
  0xc8   : > { %1638 = vmatprep.mubr.bf16.mxu0 %v4613_v20  ;;  %1991 = vmatprep.mubr.bf16.mxu1 %v4613_v20 }
  0xcf   : > { %1639 = vmatmul.mubr.bf16.gmra.mxu0 %v4615_v21  ;;  %1992 = vmatmul.mubr.bf16.gmra.mxu1 %v4615_v21 }
  0xd0   : > { %1648 = vmatprep.mubr.bf16.mxu0 %v4616_v22  ;;  %2001 = vmatprep.mubr.bf16.mxu1 %v4616_v22 }
  0xd7   : > { %1649 = vmatmul.mubr.bf16.gmra.mxu0 %v4618_v23  ;;  %2002 = vmatmul.mubr.bf16.gmra.mxu1 %v4618_v23  ;;  %v4666_v23 = vld [vmem:[%s4962_s23 + $0x1b0] ss:$8 sps:$4 sm:$0xff]  }
  0xd8   : > { %1658 = vmatprep.mubr.bf16.mxu0 %v4619_v24  ;;  %2011 = vmatprep.mubr.bf16.mxu1 %v4619_v24  ;;  %v4669_v24 = vld [vmem:[%s4962_s23 + $0x1c4] ss:$8 sps:$4 sm:$0xff]  }
  0xdf   : > { %1659 = vmatmul.mubr.bf16.gmra.mxu0 %v4621_v25  ;;  %2012 = vmatmul.mubr.bf16.gmra.mxu1 %v4621_v25 }
  0xe0   : > { %1668 = vmatprep.mubr.bf16.mxu0 %v4622_v26  ;;  %2021 = vmatprep.mubr.bf16.mxu1 %v4622_v26 }
  0xe7   : > { %1669 = vmatmul.mubr.bf16.gmra.mxu0 %v4624_v27  ;;  %2022 = vmatmul.mubr.bf16.gmra.mxu1 %v4624_v27 }
  0xe8   : > { %1678 = vmatprep.mubr.bf16.mxu0 %v4625_v28  ;;  %2031 = vmatprep.mubr.bf16.mxu1 %v4625_v28 }
  0xef   : > { %1679 = vmatmul.mubr.bf16.gmra.mxu0 %v4627_v29  ;;  %2032 = vmatmul.mubr.bf16.gmra.mxu1 %v4627_v29 }
  0xf0   : > { %1688 = vmatprep.mubr.bf16.mxu0 %v4628_v30  ;;  %2041 = vmatprep.mubr.bf16.mxu1 %v4628_v30 }
  0xf7   : > { %1689 = vmatmul.mubr.bf16.gmra.mxu0 %v4630_v31  ;;  %2042 = vmatmul.mubr.bf16.gmra.mxu1 %v4630_v31 }
  0xf8   : > { %1698 = vmatprep.mubr.bf16.mxu0 %v4631_v32  ;;  %2051 = vmatprep.mubr.bf16.mxu1 %v4631_v32 }
  0xff   : > { %1699 = vmatmul.mubr.bf16.gmra.mxu0 %v4633_v33  ;;  %2052 = vmatmul.mubr.bf16.gmra.mxu1 %v4633_v33 }
 0x100   : > { %1708 = vmatprep.mubr.bf16.mxu0 %v4634_v34  ;;  %2061 = vmatprep.mubr.bf16.mxu1 %v4634_v34 }
 0x107   : > { %1709 = vmatmul.mubr.bf16.gmra.mxu0 %v4636_v35  ;;  %2062 = vmatmul.mubr.bf16.gmra.mxu1 %v4636_v35 }
 0x108   : > { %1718 = vmatprep.mubr.bf16.mxu0 %v4637_v36  ;;  %2071 = vmatprep.mubr.bf16.mxu1 %v4637_v36 }
 0x10f   : > { %1719 = vmatmul.mubr.bf16.gmra.mxu0 %v4639_v37  ;;  %2072 = vmatmul.mubr.bf16.gmra.mxu1 %v4639_v37  ;;  %v4667_v37 = vld [vmem:[%s4962_s23 + $0x1c0] ss:$8 sps:$4 sm:$0xff]  }
 0x110   : > { %1728 = vmatprep.mubr.bf16.mxu0 %v4640_v38  ;;  %2081 = vmatprep.mubr.bf16.mxu1 %v4640_v38  ;;  %v4672_v38 = vld [vmem:[%s4962_s23 + $0x1d4] ss:$8 sps:$4 sm:$0xff]  }
 0x117   : > { %1729 = vmatmul.mubr.bf16.gmra.mxu0 %v4642_v39  ;;  %2082 = vmatmul.mubr.bf16.gmra.mxu1 %v4642_v39 }
 0x118   : > { %1738 = vmatprep.mubr.bf16.mxu0 %v4643_v40  ;;  %2091 = vmatprep.mubr.bf16.mxu1 %v4643_v40 }
 0x11f   : > { %1739 = vmatmul.mubr.bf16.gmra.mxu0 %v4645_v41  ;;  %2092 = vmatmul.mubr.bf16.gmra.mxu1 %v4645_v41 }
 0x120   : > { %1748 = vmatprep.mubr.bf16.mxu0 %v4646_v42  ;;  %2101 = vmatprep.mubr.bf16.mxu1 %v4646_v42 }
 0x127   : > { %1749 = vmatmul.mubr.bf16.gmra.mxu0 %v4648_v43  ;;  %2102 = vmatmul.mubr.bf16.gmra.mxu1 %v4648_v43 }
 0x128   : > { %1758 = vmatprep.mubr.bf16.mxu0 %v4649_v44  ;;  %2111 = vmatprep.mubr.bf16.mxu1 %v4649_v44 }
 0x12f   : > { %1759 = vmatmul.mubr.bf16.gmra.mxu0 %v4651_v45  ;;  %2112 = vmatmul.mubr.bf16.gmra.mxu1 %v4651_v45 }
 0x130   : > { %1768 = vmatprep.mubr.bf16.mxu0 %v4652_v46  ;;  %2121 = vmatprep.mubr.bf16.mxu1 %v4652_v46 }
 0x137   : > { %1769 = vmatmul.mubr.bf16.gmra.mxu0 %v4654_v47  ;;  %2122 = vmatmul.mubr.bf16.gmra.mxu1 %v4654_v47 }
 0x138   : > { %1778 = vmatprep.mubr.bf16.mxu0 %v4655_v48  ;;  %2131 = vmatprep.mubr.bf16.mxu1 %v4655_v48 }
 0x13f   : > { %v1540_v51 = vpop.f32.mrf.mxu0  ;;  %1779 = vmatmul.mubr.bf16.gmra.mxu0 %v4657_v49  ;;  %v1893_v52 = vpop.f32.mrf.mxu1  ;;  %2132 = vmatmul.mubr.bf16.gmra.mxu1 %v4657_v49 }
 0x140   : > { %1788 = vmatprep.mubr.bf16.mxu0 %v4658_v50  ;;  %2141 = vmatprep.mubr.bf16.mxu1 %v4658_v50 }
 0x141   : > { %v1542_v53 = vpop.f32.mrf.mxu0  ;;  %v1895_v54 = vpop.f32.mrf.mxu1 }
 0x142   : > { %v4278_v55 = vpack.c.bf16 %v1542_v53, %v1540_v51  ;;  %v4279_v56 = vpack.c.bf16 %v1895_v54, %v1893_v52  ;;  %v4670_v51 = vld [vmem:[%s4962_s23 + $0x1d0] ss:$8 sps:$4 sm:$0xff]   ;;  %v4675_v52 = vld [vmem:[%s4962_s23 + $0x1e4] ss:$8 sps:$4 sm:$0xff]  }
 0x143   : > { %v1544_v57 = vpop.f32.mrf.mxu0  ;;  %v1897_v58 = vpop.f32.mrf.mxu1 }
 0x144   : > { %3751 = vst [vmem:[%s5025_s19] sm:$0xff] %v4278_v55  ;;  %3752 = vst [vmem:[%s5025_s19 + $0x8] sm:$0xff] %v4279_v56 }
 0x145   : > { %v1546_v61 = vpop.f32.mrf.mxu0  ;;  %v1899_v62 = vpop.f32.mrf.mxu1 }
 0x146   : > { %v4280_v63 = vpack.c.bf16 %v1546_v61, %v1544_v57  ;;  %v4281_v0 = vpack.c.bf16 %v1899_v62, %v1897_v58 }
 0x147   : > { %v1550_v1 = vpop.f32.mrf.mxu0  ;;  %1789 = vmatmul.mubr.bf16.gmra.mxu0 %v4660_v59  ;;  %v1903_v2 = vpop.f32.mrf.mxu1  ;;  %2142 = vmatmul.mubr.bf16.gmra.mxu1 %v4660_v59 }
 0x148   : > { %3753 = vst [vmem:[%s5025_s19 + $0x10] sm:$0xff] %v4280_v63  ;;  %3754 = vst [vmem:[%s5025_s19 + $0x18] sm:$0xff] %v4281_v0  ;;  %1798 = vmatprep.mubr.bf16.mxu0 %v4661_v60  ;;  %2151 = vmatprep.mubr.bf16.mxu1 %v4661_v60 }
 0x149   : > { %v1552_v3 = vpop.f32.mrf.mxu0  ;;  %v1905_v4 = vpop.f32.mrf.mxu1 }
 0x14a   : > { %v4282_v5 = vpack.c.bf16 %v1552_v3, %v1550_v1  ;;  %v4283_v6 = vpack.c.bf16 %v1905_v4, %v1903_v2  ;;  %v4673_v1 = vld [vmem:[%s4962_s23 + $0x1e0] ss:$8 sps:$4 sm:$0xff]   ;;  %v4678_v2 = vld [vmem:[%s4962_s23 + $0x1f4] ss:$8 sps:$4 sm:$0xff]  }
 0x14b   : > { %v1554_v7 = vpop.f32.mrf.mxu0  ;;  %v1907_v8 = vpop.f32.mrf.mxu1 }
 0x14c   : > { %3755 = vst [vmem:[%s5025_s19 + $0x20] sm:$0xff] %v4282_v5  ;;  %3756 = vst [vmem:[%s5025_s19 + $0x28] sm:$0xff] %v4283_v6 }
 0x14d   : > { %v1556_v11 = vpop.f32.mrf.mxu0  ;;  %v1909_v12 = vpop.f32.mrf.mxu1 }
 0x14e   : > { %v4284_v13 = vpack.c.bf16 %v1556_v11, %v1554_v7  ;;  %v4285_v14 = vpack.c.bf16 %v1909_v12, %v1907_v8 }
 0x14f   : > { %v1560_v15 = vpop.f32.mrf.mxu0  ;;  %1799 = vmatmul.mubr.bf16.gmra.mxu0 %v4663_v9  ;;  %v1913_v16 = vpop.f32.mrf.mxu1  ;;  %2152 = vmatmul.mubr.bf16.gmra.mxu1 %v4663_v9 }
 0x150   : > { %3757 = vst [vmem:[%s5025_s19 + $0x30] sm:$0xff] %v4284_v13  ;;  %3758 = vst [vmem:[%s5025_s19 + $0x38] sm:$0xff] %v4285_v14  ;;  %1808 = vmatprep.mubr.bf16.mxu0 %v4664_v10  ;;  %2161 = vmatprep.mubr.bf16.mxu1 %v4664_v10 }
 0x151   : > { %v1562_v17 = vpop.f32.mrf.mxu0  ;;  %v1915_v18 = vpop.f32.mrf.mxu1 }
 0x152   : > { %v4286_v19 = vpack.c.bf16 %v1562_v17, %v1560_v15  ;;  %v4287_v20 = vpack.c.bf16 %v1915_v18, %v1913_v16  ;;  %v4676_v15 = vld [vmem:[%s4962_s23 + $0x1f0] ss:$8 sps:$4 sm:$0xff]  }
 0x153   : > { %v1564_v21 = vpop.f32.mrf.mxu0  ;;  %v1917_v22 = vpop.f32.mrf.mxu1 }
 0x154   : > { %3759 = vst [vmem:[%s5025_s19 + $0x40] sm:$0xff] %v4286_v19  ;;  %3760 = vst [vmem:[%s5025_s19 + $0x48] sm:$0xff] %v4287_v20 }
 0x155   : > { %v1566_v25 = vpop.f32.mrf.mxu0  ;;  %v1919_v26 = vpop.f32.mrf.mxu1 }
 0x156   : > { %v4288_v27 = vpack.c.bf16 %v1566_v25, %v1564_v21  ;;  %v4289_v28 = vpack.c.bf16 %v1919_v26, %v1917_v22 }
 0x157   : > { %v1570_v29 = vpop.f32.mrf.mxu0  ;;  %1809 = vmatmul.mubr.bf16.gmra.mxu0 %v4666_v23  ;;  %v1923_v30 = vpop.f32.mrf.mxu1  ;;  %2162 = vmatmul.mubr.bf16.gmra.mxu1 %v4666_v23 }
 0x158   : > { %3761 = vst [vmem:[%s5025_s19 + $0x50] sm:$0xff] %v4288_v27  ;;  %3762 = vst [vmem:[%s5025_s19 + $0x58] sm:$0xff] %v4289_v28  ;;  %1818 = vmatprep.mubr.bf16.mxu0 %v4669_v24  ;;  %2171 = vmatprep.mubr.bf16.mxu1 %v4669_v24 }
 0x159   : > { %v1572_v31 = vpop.f32.mrf.mxu0  ;;  %v1925_v32 = vpop.f32.mrf.mxu1 }
 0x15a   : > { %v4290_v33 = vpack.c.bf16 %v1572_v31, %v1570_v29  ;;  %v4291_v34 = vpack.c.bf16 %v1925_v32, %v1923_v30 }
 0x15b   : > { %v1574_v35 = vpop.f32.mrf.mxu0  ;;  %v1927_v36 = vpop.f32.mrf.mxu1 }
 0x15c   : > { %3763 = vst [vmem:[%s5025_s19 + $0x60] sm:$0xff] %v4290_v33  ;;  %3764 = vst [vmem:[%s5025_s19 + $0x68] sm:$0xff] %v4291_v34 }
 0x15d   : > { %v1576_v39 = vpop.f32.mrf.mxu0  ;;  %v1929_v40 = vpop.f32.mrf.mxu1 }
 0x15e   : > { %v4292_v41 = vpack.c.bf16 %v1576_v39, %v1574_v35  ;;  %v4293_v42 = vpack.c.bf16 %v1929_v40, %v1927_v36 }
 0x15f   : > { %v1580_v43 = vpop.f32.mrf.mxu0  ;;  %1819 = vmatmul.mubr.bf16.gmra.mxu0 %v4667_v37  ;;  %v1933_v44 = vpop.f32.mrf.mxu1  ;;  %2172 = vmatmul.mubr.bf16.gmra.mxu1 %v4667_v37 }
 0x160   : > { %3765 = vst [vmem:[%s5025_s19 + $0x70] sm:$0xff] %v4292_v41  ;;  %3766 = vst [vmem:[%s5025_s19 + $0x78] sm:$0xff] %v4293_v42  ;;  %1828 = vmatprep.mubr.bf16.mxu0 %v4672_v38  ;;  %2181 = vmatprep.mubr.bf16.mxu1 %v4672_v38 }
 0x161   : > { %v1582_v45 = vpop.f32.mrf.mxu0  ;;  %v1935_v46 = vpop.f32.mrf.mxu1 }
 0x162   : > { %v4294_v47 = vpack.c.bf16 %v1582_v45, %v1580_v43  ;;  %v4295_v48 = vpack.c.bf16 %v1935_v46, %v1933_v44 }
 0x163   : > { %v1584_v49 = vpop.f32.mrf.mxu0  ;;  %v1937_v50 = vpop.f32.mrf.mxu1 }
 0x164   : > { %3767 = vst [vmem:[%s5025_s19 + $0x80] sm:$0xff] %v4294_v47  ;;  %3768 = vst [vmem:[%s5025_s19 + $0x88] sm:$0xff] %v4295_v48 }
 0x165   : > { %v1586_v53 = vpop.f32.mrf.mxu0  ;;  %v1939_v54 = vpop.f32.mrf.mxu1 }
 0x166   : > { %v4296_v55 = vpack.c.bf16 %v1586_v53, %v1584_v49  ;;  %v4297_v56 = vpack.c.bf16 %v1939_v54, %v1937_v50 }
 0x167   : > { %v1590_v57 = vpop.f32.mrf.mxu0  ;;  %1829 = vmatmul.mubr.bf16.gmra.mxu0 %v4670_v51  ;;  %v1943_v58 = vpop.f32.mrf.mxu1  ;;  %2182 = vmatmul.mubr.bf16.gmra.mxu1 %v4670_v51 }
 0x168   : > { %3769 = vst [vmem:[%s5025_s19 + $0x90] sm:$0xff] %v4296_v55  ;;  %3770 = vst [vmem:[%s5025_s19 + $0x98] sm:$0xff] %v4297_v56  ;;  %1838 = vmatprep.mubr.bf16.mxu0 %v4675_v52  ;;  %2191 = vmatprep.mubr.bf16.mxu1 %v4675_v52 }
 0x169   : > { %v1592_v59 = vpop.f32.mrf.mxu0  ;;  %v1945_v60 = vpop.f32.mrf.mxu1 }
 0x16a   : > { %v4298_v61 = vpack.c.bf16 %v1592_v59, %v1590_v57  ;;  %v4299_v62 = vpack.c.bf16 %v1945_v60, %v1943_v58 }
 0x16b   : > { %v1594_v63 = vpop.f32.mrf.mxu0  ;;  %v1947_v0 = vpop.f32.mrf.mxu1 }
 0x16c   : > { %3771 = vst [vmem:[%s5025_s19 + $0xa0] sm:$0xff] %v4298_v61  ;;  %3772 = vst [vmem:[%s5025_s19 + $0xa8] sm:$0xff] %v4299_v62 }
 0x16d   : > { %v1596_v3 = vpop.f32.mrf.mxu0  ;;  %v1949_v4 = vpop.f32.mrf.mxu1 }
 0x16e   : > { %v4300_v5 = vpack.c.bf16 %v1596_v3, %v1594_v63  ;;  %v4301_v6 = vpack.c.bf16 %v1949_v4, %v1947_v0 }
 0x16f   : > { %v1600_v7 = vpop.f32.mrf.mxu0  ;;  %1839 = vmatmul.mubr.bf16.gmra.mxu0 %v4673_v1  ;;  %v1953_v8 = vpop.f32.mrf.mxu1  ;;  %2192 = vmatmul.mubr.bf16.gmra.mxu1 %v4673_v1 }
 0x170   : > { %3773 = vst [vmem:[%s5025_s19 + $0xb0] sm:$0xff] %v4300_v5  ;;  %3774 = vst [vmem:[%s5025_s19 + $0xb8] sm:$0xff] %v4301_v6  ;;  %1848 = vmatprep.mubr.bf16.mxu0 %v4678_v2  ;;  %2201 = vmatprep.mubr.bf16.mxu1 %v4678_v2 }
 0x171   : > { %v1602_v9 = vpop.f32.mrf.mxu0  ;;  %v1955_v10 = vpop.f32.mrf.mxu1 }
 0x172   : > { %v4302_v11 = vpack.c.bf16 %v1602_v9, %v1600_v7  ;;  %v4303_v12 = vpack.c.bf16 %v1955_v10, %v1953_v8 }
 0x173   : > { %v1604_v13 = vpop.f32.mrf.mxu0  ;;  %v1957_v14 = vpop.f32.mrf.mxu1 }
 0x174   : > { %3775 = vst [vmem:[%s5025_s19 + $0xc0] sm:$0xff] %v4302_v11  ;;  %3776 = vst [vmem:[%s5025_s19 + $0xc8] sm:$0xff] %v4303_v12 }
 0x175   : > { %v1606_v16 = vpop.f32.mrf.mxu0  ;;  %v1959_v17 = vpop.f32.mrf.mxu1 }
 0x176   : > { %v4304_v18 = vpack.c.bf16 %v1606_v16, %v1604_v13  ;;  %v4305_v19 = vpack.c.bf16 %v1959_v17, %v1957_v14 }
 0x177   : > { %v1610_v20 = vpop.f32.mrf.mxu0  ;;  %1849 = vmatmul.mubr.bf16.gmra.mxu0 %v4676_v15  ;;  %v1963_v21 = vpop.f32.mrf.mxu1  ;;  %2202 = vmatmul.mubr.bf16.gmra.mxu1 %v4676_v15 }
 0x178   : > { %3777 = vst [vmem:[%s5025_s19 + $0xd0] sm:$0xff] %v4304_v18  ;;  %3778 = vst [vmem:[%s5025_s19 + $0xd8] sm:$0xff] %v4305_v19 }
 0x179   : > { %v1612_v22 = vpop.f32.mrf.mxu0  ;;  %v1965_v23 = vpop.f32.mrf.mxu1 }
 0x17a   : > { %v4306_v24 = vpack.c.bf16 %v1612_v22, %v1610_v20  ;;  %v4307_v25 = vpack.c.bf16 %v1965_v23, %v1963_v21 }
 0x17b   : > { %v1614_v26 = vpop.f32.mrf.mxu0  ;;  %v1967_v27 = vpop.f32.mrf.mxu1 }
 0x17c   : > { %3779 = vst [vmem:[%s5025_s19 + $0xe0] sm:$0xff] %v4306_v24  ;;  %3780 = vst [vmem:[%s5025_s19 + $0xe8] sm:$0xff] %v4307_v25 }
 0x17d   : > { %v1616_v28 = vpop.f32.mrf.mxu0  ;;  %v1969_v29 = vpop.f32.mrf.mxu1 }
 0x17e   : > { %v4308_v30 = vpack.c.bf16 %v1616_v28, %v1614_v26  ;;  %v4309_v31 = vpack.c.bf16 %v1969_v29, %v1967_v27 }
 0x17f   : > { %v1620_v32 = vpop.f32.mrf.mxu0  ;;  %v1973_v33 = vpop.f32.mrf.mxu1 }
 0x180   : > { %3781 = vst [vmem:[%s5025_s19 + $0xf0] sm:$0xff] %v4308_v30  ;;  %3782 = vst [vmem:[%s5025_s19 + $0xf8] sm:$0xff] %v4309_v31 }
 0x181   : > { %v1622_v34 = vpop.f32.mrf.mxu0  ;;  %v1975_v35 = vpop.f32.mrf.mxu1 }
 0x182   : > { %v4310_v36 = vpack.c.bf16 %v1622_v34, %v1620_v32  ;;  %v4311_v37 = vpack.c.bf16 %v1975_v35, %v1973_v33 }
 0x183   : > { %v1624_v38 = vpop.f32.mrf.mxu0  ;;  %v1977_v39 = vpop.f32.mrf.mxu1 }
 0x184   : > { %3783 = vst [vmem:[%s5025_s19 + $0x100] sm:$0xff] %v4310_v36  ;;  %3784 = vst [vmem:[%s5025_s19 + $0x108] sm:$0xff] %v4311_v37 }
 0x185   : > { %v1626_v40 = vpop.f32.mrf.mxu0  ;;  %v1979_v41 = vpop.f32.mrf.mxu1 }
 0x186   : > { %v4312_v42 = vpack.c.bf16 %v1626_v40, %v1624_v38  ;;  %v4313_v43 = vpack.c.bf16 %v1979_v41, %v1977_v39 }
 0x187   : > { %v1630_v44 = vpop.f32.mrf.mxu0  ;;  %v1983_v45 = vpop.f32.mrf.mxu1 }
 0x188   : > { %3785 = vst [vmem:[%s5025_s19 + $0x110] sm:$0xff] %v4312_v42  ;;  %3786 = vst [vmem:[%s5025_s19 + $0x118] sm:$0xff] %v4313_v43 }
 0x189   : > { %v1632_v46 = vpop.f32.mrf.mxu0  ;;  %v1985_v47 = vpop.f32.mrf.mxu1 }
 0x18a   : > { %v4314_v48 = vpack.c.bf16 %v1632_v46, %v1630_v44  ;;  %v4315_v49 = vpack.c.bf16 %v1985_v47, %v1983_v45 }
 0x18b   : > { %v1634_v50 = vpop.f32.mrf.mxu0  ;;  %v1987_v51 = vpop.f32.mrf.mxu1 }
 0x18c   : > { %3787 = vst [vmem:[%s5025_s19 + $0x120] sm:$0xff] %v4314_v48  ;;  %3788 = vst [vmem:[%s5025_s19 + $0x128] sm:$0xff] %v4315_v49 }
 0x18d   : > { %v1636_v52 = vpop.f32.mrf.mxu0  ;;  %v1989_v53 = vpop.f32.mrf.mxu1 }
 0x18e   : > { %v4316_v54 = vpack.c.bf16 %v1636_v52, %v1634_v50  ;;  %v4317_v55 = vpack.c.bf16 %v1989_v53, %v1987_v51 }
 0x18f   : > { %v1640_v56 = vpop.f32.mrf.mxu0  ;;  %v1993_v57 = vpop.f32.mrf.mxu1 }
 0x190   : > { %3789 = vst [vmem:[%s5025_s19 + $0x130] sm:$0xff] %v4316_v54  ;;  %3790 = vst [vmem:[%s5025_s19 + $0x138] sm:$0xff] %v4317_v55 }
 0x191   : > { %v1642_v58 = vpop.f32.mrf.mxu0  ;;  %v1995_v59 = vpop.f32.mrf.mxu1 }
 0x192   : > { %v4318_v60 = vpack.c.bf16 %v1642_v58, %v1640_v56  ;;  %v4319_v61 = vpack.c.bf16 %v1995_v59, %v1993_v57 }
 0x193   : > { %v1644_v62 = vpop.f32.mrf.mxu0  ;;  %v1997_v63 = vpop.f32.mrf.mxu1 }
 0x194   : > { %3791 = vst [vmem:[%s5025_s19 + $0x140] sm:$0xff] %v4318_v60  ;;  %3792 = vst [vmem:[%s5025_s19 + $0x148] sm:$0xff] %v4319_v61 }
 0x195   : > { %v1646_v0 = vpop.f32.mrf.mxu0  ;;  %v1999_v1 = vpop.f32.mrf.mxu1 }
 0x196   : > { %v4320_v2 = vpack.c.bf16 %v1646_v0, %v1644_v62  ;;  %v4321_v3 = vpack.c.bf16 %v1999_v1, %v1997_v63 }
 0x197   : > { %v1650_v4 = vpop.f32.mrf.mxu0  ;;  %v2003_v5 = vpop.f32.mrf.mxu1 }
 0x198   : > { %3793 = vst [vmem:[%s5025_s19 + $0x150] sm:$0xff] %v4320_v2  ;;  %3794 = vst [vmem:[%s5025_s19 + $0x158] sm:$0xff] %v4321_v3 }
 0x199   : > { %v1652_v6 = vpop.f32.mrf.mxu0  ;;  %v2005_v7 = vpop.f32.mrf.mxu1 }
 0x19a   : > { %v4322_v8 = vpack.c.bf16 %v1652_v6, %v1650_v4  ;;  %v4323_v9 = vpack.c.bf16 %v2005_v7, %v2003_v5 }
 0x19b   : > { %v1654_v10 = vpop.f32.mrf.mxu0  ;;  %v2007_v11 = vpop.f32.mrf.mxu1 }
 0x19c   : > { %3795 = vst [vmem:[%s5025_s19 + $0x160] sm:$0xff] %v4322_v8  ;;  %3796 = vst [vmem:[%s5025_s19 + $0x168] sm:$0xff] %v4323_v9 }
 0x19d   : > { %v1656_v12 = vpop.f32.mrf.mxu0  ;;  %v2009_v13 = vpop.f32.mrf.mxu1 }
 0x19e   : > { %v4324_v14 = vpack.c.bf16 %v1656_v12, %v1654_v10  ;;  %v4325_v15 = vpack.c.bf16 %v2009_v13, %v2007_v11 }
 0x19f   : > { %v1660_v16 = vpop.f32.mrf.mxu0  ;;  %v2013_v17 = vpop.f32.mrf.mxu1 }
 0x1a0   : > { %3797 = vst [vmem:[%s5025_s19 + $0x170] sm:$0xff] %v4324_v14  ;;  %3798 = vst [vmem:[%s5025_s19 + $0x178] sm:$0xff] %v4325_v15 }
 0x1a1   : > { %v1662_v18 = vpop.f32.mrf.mxu0  ;;  %v2015_v19 = vpop.f32.mrf.mxu1 }
 0x1a2   : > { %v4326_v20 = vpack.c.bf16 %v1662_v18, %v1660_v16  ;;  %v4327_v21 = vpack.c.bf16 %v2015_v19, %v2013_v17 }
 0x1a3   : > { %v1664_v22 = vpop.f32.mrf.mxu0  ;;  %v2017_v23 = vpop.f32.mrf.mxu1 }
 0x1a4   : > { %3799 = vst [vmem:[%s5025_s19 + $0x180] sm:$0xff] %v4326_v20  ;;  %3800 = vst [vmem:[%s5025_s19 + $0x188] sm:$0xff] %v4327_v21 }
 0x1a5   : > { %v1666_v24 = vpop.f32.mrf.mxu0  ;;  %v2019_v25 = vpop.f32.mrf.mxu1 }
 0x1a6   : > { %v4328_v26 = vpack.c.bf16 %v1666_v24, %v1664_v22  ;;  %v4329_v27 = vpack.c.bf16 %v2019_v25, %v2017_v23 }
 0x1a7   : > { %v1670_v28 = vpop.f32.mrf.mxu0  ;;  %v2023_v29 = vpop.f32.mrf.mxu1 }
 0x1a8   : > { %3801 = vst [vmem:[%s5025_s19 + $0x190] sm:$0xff] %v4328_v26  ;;  %3802 = vst [vmem:[%s5025_s19 + $0x198] sm:$0xff] %v4329_v27 }
 0x1a9   : > { %v1672_v30 = vpop.f32.mrf.mxu0  ;;  %v2025_v31 = vpop.f32.mrf.mxu1 }
 0x1aa   : > { %v4330_v32 = vpack.c.bf16 %v1672_v30, %v1670_v28  ;;  %v4331_v33 = vpack.c.bf16 %v2025_v31, %v2023_v29 }
 0x1ab   : > { %v1674_v34 = vpop.f32.mrf.mxu0  ;;  %v2027_v35 = vpop.f32.mrf.mxu1 }
 0x1ac   : > { %3803 = vst [vmem:[%s5025_s19 + $0x1a0] sm:$0xff] %v4330_v32  ;;  %3804 = vst [vmem:[%s5025_s19 + $0x1a8] sm:$0xff] %v4331_v33 }
 0x1ad   : > { %v1676_v36 = vpop.f32.mrf.mxu0  ;;  %v2029_v37 = vpop.f32.mrf.mxu1 }
 0x1ae   : > { %v4332_v38 = vpack.c.bf16 %v1676_v36, %v1674_v34  ;;  %v4333_v39 = vpack.c.bf16 %v2029_v37, %v2027_v35 }
 0x1af   : > { %v1680_v40 = vpop.f32.mrf.mxu0  ;;  %v2033_v41 = vpop.f32.mrf.mxu1 }
 0x1b0   : > { %3805 = vst [vmem:[%s5025_s19 + $0x1b0] sm:$0xff] %v4332_v38  ;;  %3806 = vst [vmem:[%s5025_s19 + $0x1b8] sm:$0xff] %v4333_v39 }
 0x1b1   : > { %v1682_v42 = vpop.f32.mrf.mxu0  ;;  %v2035_v43 = vpop.f32.mrf.mxu1 }
 0x1b2   : > { %v4334_v44 = vpack.c.bf16 %v1682_v42, %v1680_v40  ;;  %v4335_v45 = vpack.c.bf16 %v2035_v43, %v2033_v41 }
 0x1b3   : > { %v1684_v46 = vpop.f32.mrf.mxu0  ;;  %v2037_v47 = vpop.f32.mrf.mxu1 }
 0x1b4   : > { %3807 = vst [vmem:[%s5025_s19 + $0x1c0] sm:$0xff] %v4334_v44  ;;  %3808 = vst [vmem:[%s5025_s19 + $0x1c8] sm:$0xff] %v4335_v45 }
 0x1b5   : > { %v1686_v48 = vpop.f32.mrf.mxu0  ;;  %v2039_v49 = vpop.f32.mrf.mxu1 }
 0x1b6   : > { %v4336_v50 = vpack.c.bf16 %v1686_v48, %v1684_v46  ;;  %v4337_v51 = vpack.c.bf16 %v2039_v49, %v2037_v47 }
 0x1b7   : > { %v1690_v52 = vpop.f32.mrf.mxu0  ;;  %v2043_v53 = vpop.f32.mrf.mxu1 }
 0x1b8   : > { %3809 = vst [vmem:[%s5025_s19 + $0x1d0] sm:$0xff] %v4336_v50  ;;  %3810 = vst [vmem:[%s5025_s19 + $0x1d8] sm:$0xff] %v4337_v51 }
 0x1b9   : > { %v1692_v54 = vpop.f32.mrf.mxu0  ;;  %v2045_v55 = vpop.f32.mrf.mxu1 }
 0x1ba   : > { %v4338_v56 = vpack.c.bf16 %v1692_v54, %v1690_v52  ;;  %v4339_v57 = vpack.c.bf16 %v2045_v55, %v2043_v53 }
 0x1bb   : > { %v1694_v58 = vpop.f32.mrf.mxu0  ;;  %v2047_v59 = vpop.f32.mrf.mxu1 }
 0x1bc   : > { %3811 = vst [vmem:[%s5025_s19 + $0x1e0] sm:$0xff] %v4338_v56  ;;  %3812 = vst [vmem:[%s5025_s19 + $0x1e8] sm:$0xff] %v4339_v57 }
 0x1bd   : > { %v1696_v60 = vpop.f32.mrf.mxu0  ;;  %v2049_v61 = vpop.f32.mrf.mxu1 }
 0x1be   : > { %v4340_v62 = vpack.c.bf16 %v1696_v60, %v1694_v58  ;;  %v4341_v63 = vpack.c.bf16 %v2049_v61, %v2047_v59 }
 0x1bf   : > { %v1700_v0 = vpop.f32.mrf.mxu0  ;;  %v2053_v1 = vpop.f32.mrf.mxu1 }
 0x1c0   : > { %3813 = vst [vmem:[%s5025_s19 + $0x1f0] sm:$0xff] %v4340_v62  ;;  %3814 = vst [vmem:[%s5025_s19 + $0x1f8] sm:$0xff] %v4341_v63 }
 0x1c1   : > { %v1702_v2 = vpop.f32.mrf.mxu0  ;;  %v2055_v3 = vpop.f32.mrf.mxu1 }
 0x1c2   : > { %v4342_v4 = vpack.c.bf16 %v1702_v2, %v1700_v0  ;;  %v4343_v5 = vpack.c.bf16 %v2055_v3, %v2053_v1 }
 0x1c3   : > { %v1704_v6 = vpop.f32.mrf.mxu0  ;;  %v2057_v7 = vpop.f32.mrf.mxu1 }
 0x1c4   : > { %3815 = vst [vmem:[%s5025_s19 + $0x200] sm:$0xff] %v4342_v4  ;;  %3816 = vst [vmem:[%s5025_s19 + $0x208] sm:$0xff] %v4343_v5 }
 0x1c5   : > { %v1706_v8 = vpop.f32.mrf.mxu0  ;;  %v2059_v9 = vpop.f32.mrf.mxu1 }
 0x1c6   : > { %v4344_v10 = vpack.c.bf16 %v1706_v8, %v1704_v6  ;;  %v4345_v11 = vpack.c.bf16 %v2059_v9, %v2057_v7 }
 0x1c7   : > { %v1710_v12 = vpop.f32.mrf.mxu0  ;;  %v2063_v13 = vpop.f32.mrf.mxu1 }
 0x1c8   : > { %3817 = vst [vmem:[%s5025_s19 + $0x210] sm:$0xff] %v4344_v10  ;;  %3818 = vst [vmem:[%s5025_s19 + $0x218] sm:$0xff] %v4345_v11 }
 0x1c9   : > { %v1712_v14 = vpop.f32.mrf.mxu0  ;;  %v2065_v15 = vpop.f32.mrf.mxu1 }
 0x1ca   : > { %v4346_v16 = vpack.c.bf16 %v1712_v14, %v1710_v12  ;;  %v4347_v17 = vpack.c.bf16 %v2065_v15, %v2063_v13 }
 0x1cb   : > { %v1714_v18 = vpop.f32.mrf.mxu0  ;;  %v2067_v19 = vpop.f32.mrf.mxu1 }
 0x1cc   : > { %3819 = vst [vmem:[%s5025_s19 + $0x220] sm:$0xff] %v4346_v16  ;;  %3820 = vst [vmem:[%s5025_s19 + $0x228] sm:$0xff] %v4347_v17 }
 0x1cd   : > { %v1716_v20 = vpop.f32.mrf.mxu0  ;;  %v2069_v21 = vpop.f32.mrf.mxu1 }
 0x1ce   : > { %v4348_v22 = vpack.c.bf16 %v1716_v20, %v1714_v18  ;;  %v4349_v23 = vpack.c.bf16 %v2069_v21, %v2067_v19 }
 0x1cf   : > { %v1720_v24 = vpop.f32.mrf.mxu0  ;;  %v2073_v25 = vpop.f32.mrf.mxu1 }
 0x1d0   : > { %3821 = vst [vmem:[%s5025_s19 + $0x230] sm:$0xff] %v4348_v22  ;;  %3822 = vst [vmem:[%s5025_s19 + $0x238] sm:$0xff] %v4349_v23 }
 0x1d1   : > { %v1722_v26 = vpop.f32.mrf.mxu0  ;;  %v2075_v27 = vpop.f32.mrf.mxu1 }
 0x1d2   : > { %v4350_v28 = vpack.c.bf16 %v1722_v26, %v1720_v24  ;;  %v4351_v29 = vpack.c.bf16 %v2075_v27, %v2073_v25 }
 0x1d3   : > { %v1724_v30 = vpop.f32.mrf.mxu0  ;;  %v2077_v31 = vpop.f32.mrf.mxu1 }
 0x1d4   : > { %3823 = vst [vmem:[%s5025_s19 + $0x240] sm:$0xff] %v4350_v28  ;;  %3824 = vst [vmem:[%s5025_s19 + $0x248] sm:$0xff] %v4351_v29 }
 0x1d5   : > { %v1726_v32 = vpop.f32.mrf.mxu0  ;;  %v2079_v33 = vpop.f32.mrf.mxu1 }
 0x1d6   : > { %v4352_v34 = vpack.c.bf16 %v1726_v32, %v1724_v30  ;;  %v4353_v35 = vpack.c.bf16 %v2079_v33, %v2077_v31 }
 0x1d7   : > { %v1730_v36 = vpop.f32.mrf.mxu0  ;;  %v2083_v37 = vpop.f32.mrf.mxu1 }
 0x1d8   : > { %3825 = vst [vmem:[%s5025_s19 + $0x250] sm:$0xff] %v4352_v34  ;;  %3826 = vst [vmem:[%s5025_s19 + $0x258] sm:$0xff] %v4353_v35 }
 0x1d9   : > { %v1732_v38 = vpop.f32.mrf.mxu0  ;;  %v2085_v39 = vpop.f32.mrf.mxu1 }
 0x1da   : > { %v4354_v40 = vpack.c.bf16 %v1732_v38, %v1730_v36  ;;  %v4355_v41 = vpack.c.bf16 %v2085_v39, %v2083_v37 }
 0x1db   : > { %v1734_v42 = vpop.f32.mrf.mxu0  ;;  %v2087_v43 = vpop.f32.mrf.mxu1 }
 0x1dc   : > { %3827 = vst [vmem:[%s5025_s19 + $0x260] sm:$0xff] %v4354_v40  ;;  %3828 = vst [vmem:[%s5025_s19 + $0x268] sm:$0xff] %v4355_v41 }
 0x1dd   : > { %v1736_v44 = vpop.f32.mrf.mxu0  ;;  %v2089_v45 = vpop.f32.mrf.mxu1 }
 0x1de   : > { %v4356_v46 = vpack.c.bf16 %v1736_v44, %v1734_v42  ;;  %v4357_v47 = vpack.c.bf16 %v2089_v45, %v2087_v43 }
 0x1df   : > { %v1740_v48 = vpop.f32.mrf.mxu0  ;;  %v2093_v49 = vpop.f32.mrf.mxu1 }
 0x1e0   : > { %3829 = vst [vmem:[%s5025_s19 + $0x270] sm:$0xff] %v4356_v46  ;;  %3830 = vst [vmem:[%s5025_s19 + $0x278] sm:$0xff] %v4357_v47 }
 0x1e1   : > { %v1742_v50 = vpop.f32.mrf.mxu0  ;;  %v2095_v51 = vpop.f32.mrf.mxu1 }
 0x1e2   : > { %v4358_v52 = vpack.c.bf16 %v1742_v50, %v1740_v48  ;;  %v4359_v53 = vpack.c.bf16 %v2095_v51, %v2093_v49 }
 0x1e3   : > { %v1744_v54 = vpop.f32.mrf.mxu0  ;;  %v2097_v55 = vpop.f32.mrf.mxu1 }
 0x1e4   : > { %3831 = vst [vmem:[%s5025_s19 + $0x280] sm:$0xff] %v4358_v52  ;;  %3832 = vst [vmem:[%s5025_s19 + $0x288] sm:$0xff] %v4359_v53 }
 0x1e5   : > { %v1746_v56 = vpop.f32.mrf.mxu0  ;;  %v2099_v57 = vpop.f32.mrf.mxu1 }
 0x1e6   : > { %v4360_v58 = vpack.c.bf16 %v1746_v56, %v1744_v54  ;;  %v4361_v59 = vpack.c.bf16 %v2099_v57, %v2097_v55 }
 0x1e7   : > { %v1750_v60 = vpop.f32.mrf.mxu0  ;;  %v2103_v61 = vpop.f32.mrf.mxu1 }
 0x1e8   : > { %3833 = vst [vmem:[%s5025_s19 + $0x290] sm:$0xff] %v4360_v58  ;;  %3834 = vst [vmem:[%s5025_s19 + $0x298] sm:$0xff] %v4361_v59 }
 0x1e9   : > { %v1752_v62 = vpop.f32.mrf.mxu0  ;;  %v2105_v63 = vpop.f32.mrf.mxu1 }
 0x1ea   : > { %v4362_v0 = vpack.c.bf16 %v1752_v62, %v1750_v60  ;;  %v4363_v1 = vpack.c.bf16 %v2105_v63, %v2103_v61 }
 0x1eb   : > { %v1754_v2 = vpop.f32.mrf.mxu0  ;;  %v2107_v3 = vpop.f32.mrf.mxu1 }
 0x1ec   : > { %3835 = vst [vmem:[%s5025_s19 + $0x2a0] sm:$0xff] %v4362_v0  ;;  %3836 = vst [vmem:[%s5025_s19 + $0x2a8] sm:$0xff] %v4363_v1 }
 0x1ed   : > { %v1756_v4 = vpop.f32.mrf.mxu0  ;;  %v2109_v5 = vpop.f32.mrf.mxu1 }
 0x1ee   : > { %v4364_v6 = vpack.c.bf16 %v1756_v4, %v1754_v2  ;;  %v4365_v7 = vpack.c.bf16 %v2109_v5, %v2107_v3 }
 0x1ef   : > { %v1760_v8 = vpop.f32.mrf.mxu0  ;;  %v2113_v9 = vpop.f32.mrf.mxu1 }
 0x1f0   : > { %3837 = vst [vmem:[%s5025_s19 + $0x2b0] sm:$0xff] %v4364_v6  ;;  %3838 = vst [vmem:[%s5025_s19 + $0x2b8] sm:$0xff] %v4365_v7 }
 0x1f1   : > { %v1762_v10 = vpop.f32.mrf.mxu0  ;;  %v2115_v11 = vpop.f32.mrf.mxu1 }
 0x1f2   : > { %v4366_v12 = vpack.c.bf16 %v1762_v10, %v1760_v8  ;;  %v4367_v13 = vpack.c.bf16 %v2115_v11, %v2113_v9 }
 0x1f3   : > { %v1764_v14 = vpop.f32.mrf.mxu0  ;;  %v2117_v15 = vpop.f32.mrf.mxu1 }
 0x1f4   : > { %3839 = vst [vmem:[%s5025_s19 + $0x2c0] sm:$0xff] %v4366_v12  ;;  %3840 = vst [vmem:[%s5025_s19 + $0x2c8] sm:$0xff] %v4367_v13 }
 0x1f5   : > { %v1766_v16 = vpop.f32.mrf.mxu0  ;;  %v2119_v17 = vpop.f32.mrf.mxu1 }
 0x1f6   : > { %v4368_v18 = vpack.c.bf16 %v1766_v16, %v1764_v14  ;;  %v4369_v19 = vpack.c.bf16 %v2119_v17, %v2117_v15 }
 0x1f7   : > { %v1770_v20 = vpop.f32.mrf.mxu0  ;;  %v2123_v21 = vpop.f32.mrf.mxu1 }
 0x1f8   : > { %3841 = vst [vmem:[%s5025_s19 + $0x2d0] sm:$0xff] %v4368_v18  ;;  %3842 = vst [vmem:[%s5025_s19 + $0x2d8] sm:$0xff] %v4369_v19 }
 0x1f9   : > { %v1772_v22 = vpop.f32.mrf.mxu0  ;;  %v2125_v23 = vpop.f32.mrf.mxu1 }
 0x1fa   : > { %v4370_v24 = vpack.c.bf16 %v1772_v22, %v1770_v20  ;;  %v4371_v25 = vpack.c.bf16 %v2125_v23, %v2123_v21 }
 0x1fb   : > { %v1774_v26 = vpop.f32.mrf.mxu0  ;;  %v2127_v27 = vpop.f32.mrf.mxu1 }
 0x1fc   : > { %3843 = vst [vmem:[%s5025_s19 + $0x2e0] sm:$0xff] %v4370_v24  ;;  %3844 = vst [vmem:[%s5025_s19 + $0x2e8] sm:$0xff] %v4371_v25 }
 0x1fd   : > { %v1776_v28 = vpop.f32.mrf.mxu0  ;;  %v2129_v29 = vpop.f32.mrf.mxu1 }
 0x1fe   : > { %v4372_v30 = vpack.c.bf16 %v1776_v28, %v1774_v26  ;;  %v4373_v31 = vpack.c.bf16 %v2129_v29, %v2127_v27 }
 0x1ff   : > { %v1780_v32 = vpop.f32.mrf.mxu0  ;;  %v2133_v33 = vpop.f32.mrf.mxu1 }
 0x200   : > { %3845 = vst [vmem:[%s5025_s19 + $0x2f0] sm:$0xff] %v4372_v30  ;;  %3846 = vst [vmem:[%s5025_s19 + $0x2f8] sm:$0xff] %v4373_v31 }
 0x201   : > { %v1782_v34 = vpop.f32.mrf.mxu0  ;;  %v2135_v35 = vpop.f32.mrf.mxu1 }
 0x202   : > { %v4374_v36 = vpack.c.bf16 %v1782_v34, %v1780_v32  ;;  %v4375_v37 = vpack.c.bf16 %v2135_v35, %v2133_v33 }
 0x203   : > { %v1784_v38 = vpop.f32.mrf.mxu0  ;;  %v2137_v39 = vpop.f32.mrf.mxu1 }
 0x204   : > { %3847 = vst [vmem:[%s5025_s19 + $0x300] sm:$0xff] %v4374_v36  ;;  %3848 = vst [vmem:[%s5025_s19 + $0x308] sm:$0xff] %v4375_v37 }
 0x205   : > { %v1786_v40 = vpop.f32.mrf.mxu0  ;;  %v2139_v41 = vpop.f32.mrf.mxu1 }
 0x206   : > { %v4376_v42 = vpack.c.bf16 %v1786_v40, %v1784_v38  ;;  %v4377_v43 = vpack.c.bf16 %v2139_v41, %v2137_v39 }
 0x207   : > { %v1790_v44 = vpop.f32.mrf.mxu0  ;;  %v2143_v45 = vpop.f32.mrf.mxu1 }
 0x208   : > { %3849 = vst [vmem:[%s5025_s19 + $0x310] sm:$0xff] %v4376_v42  ;;  %3850 = vst [vmem:[%s5025_s19 + $0x318] sm:$0xff] %v4377_v43 }
 0x209   : > { %v1792_v46 = vpop.f32.mrf.mxu0  ;;  %v2145_v47 = vpop.f32.mrf.mxu1 }
 0x20a   : > { %v4378_v48 = vpack.c.bf16 %v1792_v46, %v1790_v44  ;;  %v4379_v49 = vpack.c.bf16 %v2145_v47, %v2143_v45 }
 0x20b   : > { %v1794_v50 = vpop.f32.mrf.mxu0  ;;  %v2147_v51 = vpop.f32.mrf.mxu1 }
 0x20c   : > { %3851 = vst [vmem:[%s5025_s19 + $0x320] sm:$0xff] %v4378_v48  ;;  %3852 = vst [vmem:[%s5025_s19 + $0x328] sm:$0xff] %v4379_v49 }
 0x20d   : > { %v1796_v52 = vpop.f32.mrf.mxu0  ;;  %v2149_v53 = vpop.f32.mrf.mxu1 }
 0x20e   : > { %v4380_v54 = vpack.c.bf16 %v1796_v52, %v1794_v50  ;;  %v4381_v55 = vpack.c.bf16 %v2149_v53, %v2147_v51 }
 0x20f   : > { %v1800_v56 = vpop.f32.mrf.mxu0  ;;  %v2153_v57 = vpop.f32.mrf.mxu1 }
 0x210   : > { %3853 = vst [vmem:[%s5025_s19 + $0x330] sm:$0xff] %v4380_v54  ;;  %3854 = vst [vmem:[%s5025_s19 + $0x338] sm:$0xff] %v4381_v55 }
 0x211   : > { %v1802_v58 = vpop.f32.mrf.mxu0  ;;  %v2155_v59 = vpop.f32.mrf.mxu1 }
 0x212   : > { %v4382_v60 = vpack.c.bf16 %v1802_v58, %v1800_v56  ;;  %v4383_v61 = vpack.c.bf16 %v2155_v59, %v2153_v57 }
 0x213   : > { %v1804_v62 = vpop.f32.mrf.mxu0  ;;  %v2157_v63 = vpop.f32.mrf.mxu1 }
 0x214   : > { %3855 = vst [vmem:[%s5025_s19 + $0x340] sm:$0xff] %v4382_v60  ;;  %3856 = vst [vmem:[%s5025_s19 + $0x348] sm:$0xff] %v4383_v61 }
 0x215   : > { %v1806_v0 = vpop.f32.mrf.mxu0  ;;  %v2159_v1 = vpop.f32.mrf.mxu1 }
 0x216   : > { %v4384_v2 = vpack.c.bf16 %v1806_v0, %v1804_v62  ;;  %v4385_v3 = vpack.c.bf16 %v2159_v1, %v2157_v63 }
 0x217   : > { %v1810_v4 = vpop.f32.mrf.mxu0  ;;  %v2163_v5 = vpop.f32.mrf.mxu1 }
 0x218   : > { %3857 = vst [vmem:[%s5025_s19 + $0x350] sm:$0xff] %v4384_v2  ;;  %3858 = vst [vmem:[%s5025_s19 + $0x358] sm:$0xff] %v4385_v3 }
 0x219   : > { %v1812_v6 = vpop.f32.mrf.mxu0  ;;  %v2165_v7 = vpop.f32.mrf.mxu1 }
 0x21a   : > { %v4386_v8 = vpack.c.bf16 %v1812_v6, %v1810_v4  ;;  %v4387_v9 = vpack.c.bf16 %v2165_v7, %v2163_v5 }
 0x21b   : > { %v1814_v10 = vpop.f32.mrf.mxu0  ;;  %v2167_v11 = vpop.f32.mrf.mxu1 }
 0x21c   : > { %3859 = vst [vmem:[%s5025_s19 + $0x360] sm:$0xff] %v4386_v8  ;;  %3860 = vst [vmem:[%s5025_s19 + $0x368] sm:$0xff] %v4387_v9 }
 0x21d   : > { %v1816_v12 = vpop.f32.mrf.mxu0  ;;  %v2169_v13 = vpop.f32.mrf.mxu1 }
 0x21e   : > { %v4388_v14 = vpack.c.bf16 %v1816_v12, %v1814_v10  ;;  %v4389_v15 = vpack.c.bf16 %v2169_v13, %v2167_v11 }
 0x21f   : > { %v1820_v16 = vpop.f32.mrf.mxu0  ;;  %v2173_v17 = vpop.f32.mrf.mxu1 }
 0x220   : > { %3861 = vst [vmem:[%s5025_s19 + $0x370] sm:$0xff] %v4388_v14  ;;  %3862 = vst [vmem:[%s5025_s19 + $0x378] sm:$0xff] %v4389_v15 }
 0x221   : > { %v1822_v18 = vpop.f32.mrf.mxu0  ;;  %v2175_v19 = vpop.f32.mrf.mxu1 }
 0x222   : > { %v4390_v20 = vpack.c.bf16 %v1822_v18, %v1820_v16  ;;  %v4391_v21 = vpack.c.bf16 %v2175_v19, %v2173_v17 }
 0x223   : > { %v1824_v22 = vpop.f32.mrf.mxu0  ;;  %v2177_v23 = vpop.f32.mrf.mxu1 }
 0x224   : > { %3863 = vst [vmem:[%s5025_s19 + $0x380] sm:$0xff] %v4390_v20  ;;  %3864 = vst [vmem:[%s5025_s19 + $0x388] sm:$0xff] %v4391_v21 }
 0x225   : > { %v1826_v24 = vpop.f32.mrf.mxu0  ;;  %v2179_v25 = vpop.f32.mrf.mxu1 }
 0x226   : > { %v4392_v26 = vpack.c.bf16 %v1826_v24, %v1824_v22  ;;  %v4393_v27 = vpack.c.bf16 %v2179_v25, %v2177_v23 }
 0x227   : > { %v1830_v28 = vpop.f32.mrf.mxu0  ;;  %v2183_v29 = vpop.f32.mrf.mxu1 }
 0x228   : > { %3865 = vst [vmem:[%s5025_s19 + $0x390] sm:$0xff] %v4392_v26  ;;  %3866 = vst [vmem:[%s5025_s19 + $0x398] sm:$0xff] %v4393_v27 }
 0x229   : > { %v1832_v30 = vpop.f32.mrf.mxu0  ;;  %v2185_v31 = vpop.f32.mrf.mxu1 }
 0x22a   : > { %v4394_v32 = vpack.c.bf16 %v1832_v30, %v1830_v28  ;;  %v4395_v33 = vpack.c.bf16 %v2185_v31, %v2183_v29 }
 0x22b   : > { %v1834_v34 = vpop.f32.mrf.mxu0  ;;  %v2187_v35 = vpop.f32.mrf.mxu1 }
 0x22c   : > { %3867 = vst [vmem:[%s5025_s19 + $0x3a0] sm:$0xff] %v4394_v32  ;;  %3868 = vst [vmem:[%s5025_s19 + $0x3a8] sm:$0xff] %v4395_v33 }
 0x22d   : > { %v1836_v36 = vpop.f32.mrf.mxu0  ;;  %v2189_v37 = vpop.f32.mrf.mxu1 }
 0x22e   : > { %v4396_v38 = vpack.c.bf16 %v1836_v36, %v1834_v34  ;;  %v4397_v39 = vpack.c.bf16 %v2189_v37, %v2187_v35 }
 0x22f   : > { %v1840_v40 = vpop.f32.mrf.mxu0  ;;  %v2193_v41 = vpop.f32.mrf.mxu1 }
 0x230   : > { %3869 = vst [vmem:[%s5025_s19 + $0x3b0] sm:$0xff] %v4396_v38  ;;  %3870 = vst [vmem:[%s5025_s19 + $0x3b8] sm:$0xff] %v4397_v39 }
 0x231   : > { %v1842_v42 = vpop.f32.mrf.mxu0  ;;  %v2195_v43 = vpop.f32.mrf.mxu1 }
 0x232   : > { %v4398_v44 = vpack.c.bf16 %v1842_v42, %v1840_v40  ;;  %v4399_v45 = vpack.c.bf16 %v2195_v43, %v2193_v41 }
 0x233   : > { %v1844_v46 = vpop.f32.mrf.mxu0  ;;  %v2197_v47 = vpop.f32.mrf.mxu1 }
 0x234   : > { %3871 = vst [vmem:[%s5025_s19 + $0x3c0] sm:$0xff] %v4398_v44  ;;  %3872 = vst [vmem:[%s5025_s19 + $0x3c8] sm:$0xff] %v4399_v45 }
 0x235   : > { %v1846_v48 = vpop.f32.mrf.mxu0  ;;  %v2199_v49 = vpop.f32.mrf.mxu1 }
 0x236   : > { %v4400_v50 = vpack.c.bf16 %v1846_v48, %v1844_v46  ;;  %v4401_v51 = vpack.c.bf16 %v2199_v49, %v2197_v47 }
 0x237   : > { %v1850_v52 = vpop.f32.mrf.mxu0  ;;  %v2203_v53 = vpop.f32.mrf.mxu1 }
 0x238   : > { %3873 = vst [vmem:[%s5025_s19 + $0x3d0] sm:$0xff] %v4400_v50  ;;  %3874 = vst [vmem:[%s5025_s19 + $0x3d8] sm:$0xff] %v4401_v51 }
 0x239   : > { %v1852_v54 = vpop.f32.mrf.mxu0  ;;  %v2205_v55 = vpop.f32.mrf.mxu1 }
 0x23a   : > { %v4402_v56 = vpack.c.bf16 %v1852_v54, %v1850_v52  ;;  %v4403_v57 = vpack.c.bf16 %v2205_v55, %v2203_v53 }
 0x23b   : > { %v1854_v58 = vpop.f32.mrf.mxu0  ;;  %v2207_v59 = vpop.f32.mrf.mxu1 }
 0x23c   : > { %3875 = vst [vmem:[%s5025_s19 + $0x3e0] sm:$0xff] %v4402_v56  ;;  %3876 = vst [vmem:[%s5025_s19 + $0x3e8] sm:$0xff] %v4403_v57 }
 0x23d   : > { %v1856_v60 = vpop.f32.mrf.mxu0  ;;  %v2209_v61 = vpop.f32.mrf.mxu1 }
 0x23e   : > { %v4404_v62 = vpack.c.bf16 %v1856_v60, %v1854_v58  ;;  %v4405_v63 = vpack.c.bf16 %v2209_v61, %v2207_v59 }
 0x240   : > { %3877 = vst [vmem:[%s5025_s19 + $0x3f0] sm:$0xff] %v4404_v62  ;;  %3878 = vst [vmem:[%s5025_s19 + $0x3f8] sm:$0xff] %v4405_v63 }
 0x241   : > { %4746 = shalt.err (!%p4743_p5)
}
 0x242   : > { %s4747_s6 = scalar_lea.hbm %s5170_s18, 16384  ;;  %s4751_s16 = scalar_lea.hbm %s5224_s2, 32768 }
 0x243   : > { %p4748_p7 = scmp.ne.s32.totalorder %s5170_s18, %s4747_s6  ;;  %p4752_p9 = scmp.lt.s32.totalorder %s5170_s18, %s5224_s2 }
 0x244   : > { %p4753_p11 = scmp.lt.s32.totalorder %s4751_s16, %s4747_s6 }
 0x245   : > { %p4749_p6 = pnand %p4748_p7, %p4930_p13 }
 0x246   : > { %p4754_p12 = por %p4753_p11, %p4752_p9 }
 0x247   : > { %p4750_p4 = pneg %p4749_p6 }
 0x249   : > { %p4755_p1 = pnand %p4754_p12, %p4750_p4 }
 0x24b   : > { %4758 = shalt.err (!%p4755_p1)
}
 0x24c   : > { %s4826_s17 = smov 256   ;;  %s4827_s19 = smov 16  }
 0x24d   : > { %4414 = dma.vmem_to_hbm [thread:$0]  (%p4930_p13), %s5172_s24, 16384, %s5170_s18, %s3880_s12, %s4826_s17, %s4826_s17, %s4827_s19  }
 0x24e PF: > { %s3911_s21 = sand.u32 1, %s4797_s9   ;;  %p5236_p8 = scmp.ne.s32.totalorder %s5229_s20, 0 }
 0x24f   : > { %p5237_p10 = scmp.ge.s32.totalorder %s4817_s14, 2  ;;  %s3912_s26 = scalar_lea.sflag [#allocation5], %s3911_s21 }
 0x251   : > { %p4425_p0 = pnand %p5237_p10, %p5236_p8 }
 0x253   : > { %p4426_p2 = pneg %p4425_p0 }
 0x255   : > { %4792 = dma.done.wait (%p4426_p2), %s3912_s26, 16384  }
 0x256   : > { %4794 = vsyncadd (%p4426_p2), %s3912_s26, 4294950912  ;;  %s19_s14 = sadd.s32 1, %s4817_s14   ;;  %s5238_s9 = smov %s4801_s10 }
 0x257   : > { %p16_p3 = scmp.ge.s32.totalorder %s19_s14, 4   ;;  %s5239_s10 = smov %s4805_s11 }
 0x258   : > { %s5240_s11 = smov %s4939_s15  ;;  %s5241_s12 = smov %s4813_s13 }
 0x259   : > { %s5242_s13 = smov %s5244_s25  ;;  %18 = sbr.rel (!%p16_p3) target bundleno = 7 (0x7), region = 86 }
 0x25e   :  { %3917 = vsyncpa [#allocation4], 1 }
 0x25f   :  { %3919 = vsyncpa [#allocation4 + $0x1], 1 }
 0x260   :  { %3920 = vsyncpa [#allocation7], 1 }
 0x261   :  { %3921 = vsyncpa [#allocation5], 1 }
 0x262   :  { %3923 = vsyncpa [#allocation5 + $0x1], 1 }

</bundles_post_ra>
